<compile_context>
chip_gen: v7x
topology: tpu7x:2x2x1
jax: 0.10.0
libtpu: 0.0.40
codegen_flags: <defaults>
</compile_context>

<pallas_src>
import numpy as np
import jax
import jax.numpy as jnp
from jax.experimental import pallas as pl
from jax.experimental.pallas import tpu as pltpu


# ----------------------------------------------------------------------------
# Kernels
# ----------------------------------------------------------------------------
def _encoder_kernel(x_ref, w1_ref, b1_ref, w2_ref, b2_ref, w3_ref, b3_ref,
                    pooled_ref):
    """One grid step = one (batch element, point tile).  x_ref: (nt, 8) bf16."""
    ni = pl.program_id(1)

    def mlp(h_bf16, w_ref, b_ref):
        # bf16 x bf16 -> f32 accumulate on the MXU; bias/ReLU in f32 on VPU.
        y = jnp.dot(h_bf16, w_ref[...], preferred_element_type=jnp.float32)
        return jnp.maximum(y + b_ref[...], 0.0)

    h = mlp(x_ref[...], w1_ref, b1_ref)                      # (nt, 64)   f32
    h = mlp(h.astype(jnp.bfloat16), w2_ref, b2_ref)          # (nt, 128)  f32
    h = mlp(h.astype(jnp.bfloat16), w3_ref, b3_ref)          # (nt, 1024) f32

    nt, c = h.shape
    # 8 sublane-partial maxima: row r = max over points n (within this tile)
    # with n % 8 == r.  The split at an 8-row boundary is layout-aligned, the
    # reduction is pure VPU maxes, and the (8, 1024) store is unmasked.  The
    # final 8-way max (completing torch.max(x, 2)) happens in the wrapper.
    tile_max = jnp.max(h.reshape(nt // 8, 8, c), axis=0)     # (8, 1024)

    @pl.when(ni == 0)
    def _():
        pooled_ref[...] = tile_max

    @pl.when(ni > 0)
    def _():
        pooled_ref[...] = jnp.maximum(pooled_ref[...], tile_max)


def _decoder_kernel(g_ref, w4_ref, b4_ref, w5_ref, b5_ref, w6_ref, b6_ref,
                    w7_ref, b7_ref, out_ref, d_ref):
    """Grid = tiles of fc4's output columns.  g_ref: (B, 1024) f32 pooled."""
    j = pl.program_id(0)

    def mlp(h_bf16, w_ref, b_ref, relu=True):
        y = jnp.dot(h_bf16, w_ref[...], preferred_element_type=jnp.float32)
        y = y + b_ref[...]
        return jnp.maximum(y, 0.0) if relu else y

    # fc1..fc3 depend only on the pooled features: compute once, keep in VMEM.
    @pl.when(j == 0)
    def _():
        g = g_ref[...].astype(jnp.bfloat16)                  # (B, 1024)
        d = mlp(g, w4_ref, b4_ref)                           # (B, 512)
        d = mlp(d.astype(jnp.bfloat16), w5_ref, b5_ref)      # (B, 256)
        d = mlp(d.astype(jnp.bfloat16), w6_ref, b6_ref)      # (B, 512)
        d_ref[...] = d

    d = d_ref[...].astype(jnp.bfloat16)
    out_ref[...] = mlp(d, w7_ref, b7_ref, relu=False)        # (B, out_tile)


# ----------------------------------------------------------------------------
# Wrapper helpers
# ----------------------------------------------------------------------------
def _vmem_capacity_bytes():
    try:
        info = pltpu.get_tpu_info()
        for name in ("vmem_capacity_bytes", "vmem_bytes", "vmem_size_bytes"):
            v = getattr(info, name, None)
            if v:
                return int(v)
    except Exception:
        pass
    return 64 * 1024 * 1024          # conservative (v7x-sized) fallback


def _pick_tile(total, quantum, cap):
    """Largest multiple of `quantum` dividing `total` that is <= cap."""
    best, t = quantum, quantum
    while t <= total:
        if total % t == 0 and t <= cap:
            best = t
        t += quantum
    return best


def _const_spec(shape):
    # Block index constant across the grid -> resident in VMEM, no re-DMA;
    # single-buffer so the second buffer's VMEM is not wasted.
    nd = len(shape)
    return pl.BlockSpec(shape, lambda *_, _nd=nd: (0,) * _nd,
                        pipeline_mode=pl.Buffered(1))


# ----------------------------------------------------------------------------
# Forward pass
# ----------------------------------------------------------------------------
def pointnet_autoencoder(x_b3n, params, *, n_tile=None, out_tile=None):
    """x_b3n: (B, 3, N) float32 (PyTorch NCW).  Returns (B, 3, N) float32.

    params: 7 (W, b) float32 pairs with eval-mode BN folded
    (W: (Cin, Cout), b: (1, Cout)), as produced by init_params().
    """
    B, C, N = x_b3n.shape
    assert C == 3
    assert N % 8 == 0, "num_points must be a multiple of 8"

    vmem_cap = _vmem_capacity_bytes()
    # Rows presented to the dominant 128->1024 matmul per grid step.
    target_rows = 4096 if vmem_cap >= (96 << 20) else 2048

    nt = _pick_tile(N, 8, target_rows) if n_tile is None else n_tile
    assert N % nt == 0 and nt % 8 == 0, (N, nt)

    OUT = 3 * N
    OUT_PAD = ((OUT + 127) // 128) * 128          # lane-dense fc4 output width
    ot = _pick_tile(OUT_PAD, 128, 4096) if out_tile is None else out_tile
    assert OUT_PAD % ot == 0 and ot % 128 == 0, (OUT_PAD, ot)

    # channels-last, pad 3 -> 8 input channels, bf16 MXU operands.
    x_bn3 = jnp.transpose(x_b3n, (0, 2, 1))                  # (B, N, 3)
    x_pad = jnp.pad(x_bn3, ((0, 0), (0, 0), (0, 5))).astype(jnp.bfloat16)

    # kernel-side params: pad conv1 input 3 -> 8, pad fc4 output to OUT_PAD,
    # weights bf16, biases f32.
    kparams = []
    for li, (w, b) in enumerate(params):
        if li == 0:
            w = jnp.pad(w, ((0, 8 - w.shape[0]), (0, 0)))
        if li == 6 and OUT_PAD != OUT:
            w = jnp.pad(w, ((0, 0), (0, OUT_PAD - OUT)))
            b = jnp.pad(b, ((0, 0), (0, OUT_PAD - OUT)))
        kparams.append((w.astype(jnp.bfloat16), b.astype(jnp.float32)))
    enc_params, dec_params = kparams[:3], kparams[3:]

    # ---------------- call 1: encoder + online max-pool ----------------
    enc_in_specs = [pl.BlockSpec((None, nt, 8), lambda bi, ni: (bi, ni, 0))]
    enc_args = [x_pad]
    for w, b in enc_params:
        enc_in_specs += [_const_spec(w.shape), _const_spec(b.shape)]
        enc_args += [w, b]
    enc_out_spec = pl.BlockSpec((None, 8, 1024), lambda bi, ni: (bi, 0, 0))

    enc_w_bytes = sum(int(w.nbytes) + int(b.nbytes) for w, b in enc_params)
    # live per-row bytes: x bf16 + h1 (f32 + bf16) + h2 (f32 + bf16) + h3 f32
    row_bytes = 8 * 2 + 64 * 6 + 128 * 6 + 1024 * 4
    enc_foot = (enc_w_bytes + 2 * nt * 8 * 2 + nt * row_bytes
                + 2 * 8 * 1024 * 4)
    enc_vmem = int(min(max(2 * enc_foot + (2 << 20), 8 << 20),
                       int(0.85 * vmem_cap)))
    enc_flops = 2 * B * N * (8 * 64 + 64 * 128 + 128 * 1024)
    enc_bytes = int(x_pad.nbytes) + enc_w_bytes + B * 8 * 1024 * 4

    pooled = pl.pallas_call(
        _encoder_kernel,
        out_shape=jax.ShapeDtypeStruct((B, 8, 1024), jnp.float32),
        grid=(B, N // nt),
        in_specs=enc_in_specs,
        out_specs=enc_out_spec,
        compiler_params=pltpu.CompilerParams(
            dimension_semantics=("parallel", "arbitrary"),
            vmem_limit_bytes=enc_vmem),
        cost_estimate=pl.CostEstimate(flops=enc_flops, transcendentals=0,
                                      bytes_accessed=enc_bytes),
    )(*enc_args)

    # complete torch.max(x, 2): reduce the 8 sublane-partial maxima (tiny op).
    g = jnp.max(pooled, axis=1)                              # (B, 1024) f32

    # ---------------- call 2: decoder (fc1..fc4), M = B once ----------------
    dec_in_specs = [_const_spec((B, 1024))]
    dec_args = [g]
    for w, b in dec_params[:3]:
        dec_in_specs += [_const_spec(w.shape), _const_spec(b.shape)]
        dec_args += [w, b]
    w7, b7 = dec_params[3]
    dec_in_specs += [pl.BlockSpec((w7.shape[0], ot), lambda j: (0, j)),
                     pl.BlockSpec((1, ot), lambda j: (0, j))]
    dec_args += [w7, b7]
    dec_out_spec = pl.BlockSpec((B, ot), lambda j: (0, j))

    dec_res_bytes = (sum(int(w.nbytes) + int(b.nbytes) for w, b in dec_params[:3])
                     + B * 1024 * 4 + B * 512 * 4)
    dec_foot = (dec_res_bytes + 2 * (512 * ot * 2 + ot * 4) + 2 * B * ot * 4
                + B * (1024 * 2 + 512 * 6 + 256 * 6 + 512 * 6))
    dec_vmem = int(min(max(2 * dec_foot + (2 << 20), 8 << 20),
                       int(0.85 * vmem_cap)))
    dec_flops = 2 * B * (1024 * 512 + 512 * 256 + 256 * 512 + 512 * OUT_PAD)
    dec_w_bytes = sum(int(w.nbytes) + int(b.nbytes) for w, b in dec_params)
    dec_bytes = B * 1024 * 4 + dec_w_bytes + B * OUT_PAD * 4

    y = pl.pallas_call(
        _decoder_kernel,
        out_shape=jax.ShapeDtypeStruct((B, OUT_PAD), jnp.float32),
        grid=(OUT_PAD // ot,),
        in_specs=dec_in_specs,
        out_specs=dec_out_spec,
        scratch_shapes=[pltpu.VMEM((B, 512), jnp.float32)],
        compiler_params=pltpu.CompilerParams(
            dimension_semantics=("arbitrary",),
            vmem_limit_bytes=dec_vmem),
        cost_estimate=pl.CostEstimate(flops=dec_flops, transcendentals=0,
                                      bytes_accessed=dec_bytes),
    )(*dec_args)

    # x.view(-1, 3, num_points): row-major split of the (unpadded) 3*N axis.
    return y[:, :OUT].reshape(B, 3, N)


# ----------------------------------------------------------------------------
# Parameters (BN folded) and references
# ----------------------------------------------------------------------------
def init_params(key, num_points):
    """Deterministic weights. BN (eval mode) folded into (W, b)."""
    dims = [(3, 64), (64, 128), (128, 1024),          # conv1..conv3 (+bn1..3)
            (1024, 512), (512, 256), (256, 512),      # fc1..fc3 (+bn4..6)
            (512, 3 * num_points)]                    # fc4 (no bn)
    has_bn = [True] * 6 + [False]
    eps = 1e-5
    params = []
    for (cin, cout), bn in zip(dims, has_bn):
        key, kw, kb, kg, kbt, km, kv = jax.random.split(key, 7)
        bound = 1.0 / np.sqrt(cin)
        w = jax.random.uniform(kw, (cin, cout), jnp.float32, -bound, bound)
        b = jax.random.uniform(kb, (cout,), jnp.float32, -bound, bound)
        if bn:
            gamma = jax.random.uniform(kg, (cout,), jnp.float32, 0.5, 1.5)
            beta = jax.random.uniform(kbt, (cout,), jnp.float32, -0.1, 0.1)
            mean = jax.random.uniform(km, (cout,), jnp.float32, -0.1, 0.1)
            var = jax.random.uniform(kv, (cout,), jnp.float32, 0.5, 1.5)
            s = gamma / jnp.sqrt(var + eps)
            w = w * s[None, :]
            b = b * s + (beta - mean * s)
        params.append((w, b.reshape(1, cout)))
    return params


def _mlp_ref(h, w, b, relu=True):
    y = jnp.dot(h.astype(jnp.bfloat16), w.astype(jnp.bfloat16),
                preferred_element_type=jnp.float32) + b
    return jnp.maximum(y, 0.0) if relu else y


def reference_forward_bf16(x_b3n, params):
    """Pure-JAX reference with the same bf16-operand / f32-accum math."""
    B, _, N = x_b3n.shape
    x = jnp.transpose(x_b3n, (0, 2, 1)).reshape(B * N, 3)
    x = jnp.pad(x, ((0, 0), (0, 5)))
    w1, b1 = params[0]
    h = _mlp_ref(x, jnp.pad(w1, ((0, 5), (0, 0))), b1)
    h = _mlp_ref(h, *params[1])
    h = _mlp_ref(h, *params[2])
    g = jnp.max(h.reshape(B, N, -1), axis=1)
    g = _mlp_ref(g, *params[3])
    g = _mlp_ref(g, *params[4])
    g = _mlp_ref(g, *params[5])
    w7, b7 = params[6]
    y = _mlp_ref(g, w7, b7, relu=False)
    return y.reshape(B, 3, N)


def reference_forward_f32(x_b3n, params):
    """Pure-JAX f32 reference (same folded-BN parameters)."""
    B, _, N = x_b3n.shape
    h = jnp.transpose(x_b3n, (0, 2, 1))               # (B, N, 3)
    for w, b in params[:3]:
        h = jnp.maximum(jnp.einsum('bnc,cd->bnd', h, w) + b, 0.0)
    g = jnp.max(h, axis=1)                            # (B, 1024)
    for w, b in params[3:6]:
        g = jnp.maximum(g @ w + b, 0.0)
    w, b = params[6]
    y = g @ w + b
    return y.reshape(B, 3, N)


if __name__ == "__main__":
    key = jax.random.PRNGKey(0)
    kx, kp = jax.random.split(key)

    B = 2
    NUM_POINTS = 256                                   # small, lane-aligned
    x = jax.random.normal(kx, (B, 3, NUM_POINTS), dtype=jnp.float32)
    params = init_params(kp, NUM_POINTS)

    # n_tile < N exercises the online running-max path; out_tile < 3N
    # exercises the decoder's compute-once / reuse scratch path.
    out = pointnet_autoencoder(x, params, n_tile=128, out_tile=384)
    out = jax.block_until_ready(out)
    assert out.shape == (B, 3, NUM_POINTS), out.shape

    # Exact-semantics reference (same bf16 matmul quantization, pure JAX).
    ref = reference_forward_bf16(x, params)
    np.testing.assert_allclose(np.asarray(out), np.asarray(ref),
                               rtol=2e-3, atol=2e-3)

    # Sanity check vs full-precision reference (bf16 matmuls -> loose tol).
    ref32 = reference_forward_f32(x, params)
    np.testing.assert_allclose(np.asarray(out), np.asarray(ref32),
                               rtol=1e-1, atol=1e-1)
    print("KERNEL_OK")
</pallas_src>

<mosaic_0001>
module attributes {stable_mosaic.version = 11 : i64} {
  func.func @_encoder_kernel(%arg0: i32, %arg1: i32, %arg2: memref<1x128x8xbf16, #tpu.memory_space<vmem>>, %arg3: memref<8x64xbf16, #tpu.memory_space<vmem>>, %arg4: memref<1x64xf32, #tpu.memory_space<vmem>>, %arg5: memref<64x128xbf16, #tpu.memory_space<vmem>>, %arg6: memref<1x128xf32, #tpu.memory_space<vmem>>, %arg7: memref<128x1024xbf16, #tpu.memory_space<vmem>>, %arg8: memref<1x1024xf32, #tpu.memory_space<vmem>>, %arg9: memref<1x8x1024xf32, #tpu.memory_space<vmem>>) attributes {dimension_semantics = [#tpu.dimension_semantics<parallel>, #tpu.dimension_semantics<arbitrary>], iteration_bounds = array<i64: 2, 2>, scalar_prefetch = 0 : i64, scratch_operands = 0 : i64, tpu.core_type = #tpu.core_type<tc>, window_params = [{transform_indices = @transform_0, window_bounds = array<i64: 1, 128, 8>}, {pipeline_mode = #tpu.pipeline_mode<synchronous>, transform_indices = @transform_1, window_bounds = array<i64: 8, 64>}, {pipeline_mode = #tpu.pipeline_mode<synchronous>, transform_indices = @transform_2, window_bounds = array<i64: 1, 64>}, {pipeline_mode = #tpu.pipeline_mode<synchronous>, transform_indices = @transform_3, window_bounds = array<i64: 64, 128>}, {pipeline_mode = #tpu.pipeline_mode<synchronous>, transform_indices = @transform_4, window_bounds = array<i64: 1, 128>}, {pipeline_mode = #tpu.pipeline_mode<synchronous>, transform_indices = @transform_5, window_bounds = array<i64: 128, 1024>}, {pipeline_mode = #tpu.pipeline_mode<synchronous>, transform_indices = @transform_6, window_bounds = array<i64: 1, 1024>}, {transform_indices = @transform_7, window_bounds = array<i64: 1, 8, 1024>}]} {
    %c0 = arith.constant 0 : index
    %c0_0 = arith.constant 0 : index
    %c0_1 = arith.constant 0 : index
    %0 = vector.load %arg2[%c0, %c0_0, %c0_1] : memref<1x128x8xbf16, #tpu.memory_space<vmem>>, vector<1x128x8xbf16>
    %1 = vector.shape_cast %0 : vector<1x128x8xbf16> to vector<128x8xbf16>
    %c0_2 = arith.constant 0 : index
    %c0_3 = arith.constant 0 : index
    %2 = vector.load %arg3[%c0_2, %c0_3] : memref<8x64xbf16, #tpu.memory_space<vmem>>, vector<8x64xbf16>
    %cst = arith.constant dense<0.000000e+00> : vector<128x64xf32>
    %3 = tpu.matmul %1, %2, %cst {dimension_numbers = #tpu.dot_dimension_numbers<[1], [0], [0], [1], [0, 0, 1, 1], [], []>} : vector<128x8xbf16>, vector<8x64xbf16>, vector<128x64xf32> -> vector<128x64xf32>
    %c0_4 = arith.constant 0 : index
    %c0_5 = arith.constant 0 : index
    %4 = vector.load %arg4[%c0_4, %c0_5] : memref<1x64xf32, #tpu.memory_space<vmem>>, vector<1x64xf32>
    %5 = vector.broadcast %4 : vector<1x64xf32> to vector<128x64xf32>
    %6 = arith.addf %3, %5 : vector<128x64xf32>
    %cst_6 = arith.constant 0.000000e+00 : f32
    %7 = vector.broadcast %cst_6 : f32 to vector<128x64xf32>
    %8 = arith.maximumf %6, %7 : vector<128x64xf32>
    %9 = arith.truncf %8 : vector<128x64xf32> to vector<128x64xbf16>
    %c0_7 = arith.constant 0 : index
    %c0_8 = arith.constant 0 : index
    %10 = vector.load %arg5[%c0_7, %c0_8] : memref<64x128xbf16, #tpu.memory_space<vmem>>, vector<64x128xbf16>
    %cst_9 = arith.constant dense<0.000000e+00> : vector<128x128xf32>
    %11 = tpu.matmul %9, %10, %cst_9 {dimension_numbers = #tpu.dot_dimension_numbers<[1], [0], [0], [1], [0, 0, 1, 1], [], []>} : vector<128x64xbf16>, vector<64x128xbf16>, vector<128x128xf32> -> vector<128x128xf32>
    %c0_10 = arith.constant 0 : index
    %c0_11 = arith.constant 0 : index
    %12 = vector.load %arg6[%c0_10, %c0_11] : memref<1x128xf32, #tpu.memory_space<vmem>>, vector<1x128xf32>
    %13 = vector.broadcast %12 : vector<1x128xf32> to vector<128x128xf32>
    %14 = arith.addf %11, %13 : vector<128x128xf32>
    %cst_12 = arith.constant 0.000000e+00 : f32
    %15 = vector.broadcast %cst_12 : f32 to vector<128x128xf32>
    %16 = arith.maximumf %14, %15 : vector<128x128xf32>
    %17 = arith.truncf %16 : vector<128x128xf32> to vector<128x128xbf16>
    %c0_13 = arith.constant 0 : index
    %c0_14 = arith.constant 0 : index
    %18 = vector.load %arg7[%c0_13, %c0_14] : memref<128x1024xbf16, #tpu.memory_space<vmem>>, vector<128x1024xbf16>
    %cst_15 = arith.constant dense<0.000000e+00> : vector<128x1024xf32>
    %19 = tpu.matmul %17, %18, %cst_15 {dimension_numbers = #tpu.dot_dimension_numbers<[1], [0], [0], [1], [0, 0, 1, 1], [], []>} : vector<128x128xbf16>, vector<128x1024xbf16>, vector<128x1024xf32> -> vector<128x1024xf32>
    %c0_16 = arith.constant 0 : index
    %c0_17 = arith.constant 0 : index
    %20 = vector.load %arg8[%c0_16, %c0_17] : memref<1x1024xf32, #tpu.memory_space<vmem>>, vector<1x1024xf32>
    %21 = vector.broadcast %20 : vector<1x1024xf32> to vector<128x1024xf32>
    %22 = arith.addf %19, %21 : vector<128x1024xf32>
    %cst_18 = arith.constant 0.000000e+00 : f32
    %23 = vector.broadcast %cst_18 : f32 to vector<128x1024xf32>
    %24 = arith.maximumf %22, %23 : vector<128x1024xf32>
    %25 = vector.shape_cast %24 : vector<128x1024xf32> to vector<16x8x1024xf32>
    %cst_19 = arith.constant dense<0xFF800000> : vector<8x1024xf32>
    %26 = vector.multi_reduction <maximumf>, %25, %cst_19 [0] : vector<16x8x1024xf32> to vector<8x1024xf32>
    %c0_i32 = arith.constant 0 : i32
    %27 = arith.cmpi eq, %arg1, %c0_i32 : i32
    %28 = arith.extui %27 : i1 to i32
    %c0_i32_20 = arith.constant 0 : i32
    %29 = arith.cmpi ne, %28, %c0_i32_20 : i32
    scf.if %29 {
      %c0_23 = arith.constant 0 : index
      %c0_24 = arith.constant 0 : index
      %c0_25 = arith.constant 0 : index
      %33 = vector.load %arg9[%c0_23, %c0_24, %c0_25] : memref<1x8x1024xf32, #tpu.memory_space<vmem>>, vector<1x8x1024xf32>
      %34 = vector.shape_cast %33 : vector<1x8x1024xf32> to vector<8x1024xf32>
      %35 = vector.shape_cast %26 : vector<8x1024xf32> to vector<1x8x1024xf32>
      tpu.vector_store %arg9[%c0_23, %c0_24, %c0_25], %35 {strides = array<i32>} : memref<1x8x1024xf32, #tpu.memory_space<vmem>>, vector<1x8x1024xf32>,
    } else {
    }
    %c0_i32_21 = arith.constant 0 : i32
    %30 = arith.cmpi sgt, %arg1, %c0_i32_21 : i32
    %31 = arith.extui %30 : i1 to i32
    %c0_i32_22 = arith.constant 0 : i32
    %32 = arith.cmpi ne, %31, %c0_i32_22 : i32
    scf.if %32 {
      %c0_23 = arith.constant 0 : index
      %c0_24 = arith.constant 0 : index
      %c0_25 = arith.constant 0 : index
      %33 = vector.load %arg9[%c0_23, %c0_24, %c0_25] : memref<1x8x1024xf32, #tpu.memory_space<vmem>>, vector<1x8x1024xf32>
      %34 = vector.shape_cast %33 : vector<1x8x1024xf32> to vector<8x1024xf32>
      %35 = arith.maximumf %34, %26 : vector<8x1024xf32>
      %c0_26 = arith.constant 0 : index
      %c0_27 = arith.constant 0 : index
      %c0_28 = arith.constant 0 : index
      %36 = vector.load %arg9[%c0_26, %c0_27, %c0_28] : memref<1x8x1024xf32, #tpu.memory_space<vmem>>, vector<1x8x1024xf32>
      %37 = vector.shape_cast %36 : vector<1x8x1024xf32> to vector<8x1024xf32>
      %38 = vector.shape_cast %35 : vector<8x1024xf32> to vector<1x8x1024xf32>
      tpu.vector_store %arg9[%c0_26, %c0_27, %c0_28], %38 {strides = array<i32>} : memref<1x8x1024xf32, #tpu.memory_space<vmem>>, vector<1x8x1024xf32>,
    } else {
    }
    return
  }
  func.func @transform_0(%arg0: i32, %arg1: i32) -> (i32, i32, i32) {
    %c0_i32 = arith.constant 0 : i32
    %c0_i32_0 = arith.constant 0 : i32
    return %arg0, %arg1, %c0_i32 : i32, i32, i32
  }
  func.func @transform_1(%arg0: i32, %arg1: i32) -> (i32, i32) {
    %c0_i32 = arith.constant 0 : i32
    %c0_i32_0 = arith.constant 0 : i32
    %c0_i32_1 = arith.constant 0 : i32
    return %c0_i32, %c0_i32_0 : i32, i32
  }
  func.func @transform_2(%arg0: i32, %arg1: i32) -> (i32, i32) {
    %c0_i32 = arith.constant 0 : i32
    %c0_i32_0 = arith.constant 0 : i32
    %c0_i32_1 = arith.constant 0 : i32
    return %c0_i32, %c0_i32_0 : i32, i32
  }
  func.func @transform_3(%arg0: i32, %arg1: i32) -> (i32, i32) {
    %c0_i32 = arith.constant 0 : i32
    %c0_i32_0 = arith.constant 0 : i32
    %c0_i32_1 = arith.constant 0 : i32
    return %c0_i32, %c0_i32_0 : i32, i32
  }
  func.func @transform_4(%arg0: i32, %arg1: i32) -> (i32, i32) {
    %c0_i32 = arith.constant 0 : i32
    %c0_i32_0 = arith.constant 0 : i32
    %c0_i32_1 = arith.constant 0 : i32
    return %c0_i32, %c0_i32_0 : i32, i32
  }
  func.func @transform_5(%arg0: i32, %arg1: i32) -> (i32, i32) {
    %c0_i32 = arith.constant 0 : i32
    %c0_i32_0 = arith.constant 0 : i32
    %c0_i32_1 = arith.constant 0 : i32
    return %c0_i32, %c0_i32_0 : i32, i32
  }
  func.func @transform_6(%arg0: i32, %arg1: i32) -> (i32, i32) {
    %c0_i32 = arith.constant 0 : i32
    %c0_i32_0 = arith.constant 0 : i32
    %c0_i32_1 = arith.constant 0 : i32
    return %c0_i32, %c0_i32_0 : i32, i32
  }
  func.func @transform_7(%arg0: i32, %arg1: i32) -> (i32, i32, i32) {
    %c0_i32 = arith.constant 0 : i32
    %c0_i32_0 = arith.constant 0 : i32
    %c0_i32_1 = arith.constant 0 : i32
    return %arg0, %c0_i32, %c0_i32_0 : i32, i32, i32
  }
}

</mosaic_0001>

<bundles_post_ra>
// kernel: tpu_custom_call.1
= control target key start
LH: loop header
LB: loop body
LE: loop exit
PB: predicated region body
PF: predicated region fallthrough
CT: control target
= control target key end

     0   :  { %s2978_s0 = inlined_call_operand.vmem [shape: bf16[2,256,8], index: 0, kind: input, shape index: {}]   ;;  %s2979_s1 = inlined_call_operand.vmem [shape: bf16[8,64], index: 1, kind: input, shape index: {}]   ;;  %s2980_s2 = inlined_call_operand.vmem [shape: f32[1,64], index: 2, kind: input, shape index: {}]   ;;  %s2981_s3 = inlined_call_operand.vmem [shape: bf16[64,128], index: 3, kind: input, shape index: {}]   ;;  %s2982_s4 = inlined_call_operand.vmem [shape: f32[1,128], index: 4, kind: input, shape index: {}]   ;;  %s2983_s5 = inlined_call_operand.hbm [shape: bf16[128,1024], index: 5, kind: input, shape index: {}]   ;;  %s2984_s6 = inlined_call_operand.vmem [shape: f32[1,1024], index: 6, kind: input, shape index: {}]   ;;  %s2985_s7 = inlined_call_operand.hbm [shape: f32[2,8,1024], index: 7, kind: output, shape index: {}]  }
   0x1   :  { %2994 = sst [smem:[#allocation12_spill]] %s2983_s5 }
   0x2   :  { %12 = vsyncpa [#allocation3], 0 }
   0x3   :  { %13 = vsyncpa [#allocation4], 0 }
   0x4   :  { %15 = vsyncpa [#allocation4 + $0x1], 0  ;;  %s2436_s24 = smov 0   ;;  %s2438_s25 = smov 0  }
   0x5   :  { %s2440_s26 = smov 0   ;;  %s2442_s27 = smov 0  }
   0x6   :  { %s2444_s28 = smov 0   ;;  %s2446_s29 = smov 0  }
   0x7   :  { %s2448_s30 = smov 0   ;;  %s2450_s8 = smov 0  }
   0x8 LB: > { %2995 = sst [smem:[#allocation8_spill]] %s2381_s29  ;;  %s1989_s9 = sadd.s32 4294967295, %s2389_s8   ;;  %s2389_s8 = sphi %s2450_s8, %s21_s8   ;;  %s2385_s30 = sphi %s2448_s30, %s3013_s30   ;;  %s2381_s29 = sphi %s2446_s29, %s3012_s29   ;;  %s2377_s28 = sphi %s2444_s28, %s3011_s28   ;;  %s2373_s27 = sphi %s2442_s27, %s3010_s27   ;;  %s2369_s26 = sphi %s2440_s26, %s3016_s26   ;;  %s2365_s25 = sphi %s2438_s25, %s3015_s25   ;;  %s2361_s24 = sphi %s2436_s24, %s3014_s24  }
   0x9   : > { %2996 = sst [smem:[#allocation9_spill]] %s2385_s30  ;;  %s1990_s10 = sadd.s32 4294967294, %s2389_s8  }
   0xa   : > { %s30_s11 = sadd.s32 1, %s2381_s29  ;;  %s33_s12 = sadd.s32 1, %s2385_s30 }
   0xb   : > { %p31_p0 = scmp.ge.s32.totalorder %s30_s11, 2  ;;  %s194_s13 = sadd.s32 1, %s2369_s26 }
   0xc   : > { %p204_p1 = scmp.ne.s32.totalorder %s2369_s26, %s2365_s25  ;;  %p205_p2 = scmp.eq.s32.totalorder %s1989_s9, 3 }
   0xd   : > { %s3018_s11 = smov (%p31_p0, %s30_s11), 0  ;;  %s3020_s12 = smov (!%p31_p0, %s33_s12), %s2385_s30 }
   0xe   : > { %2997 = sst [smem:[#allocation10_spill]] %s3018_s11  ;;  %p2486_p3 = por %p205_p2, %p204_p1 }
   0xf   : > { %p210_p4 = scmp.ne.s32.totalorder %s2365_s25, %s2361_s24  ;;  %p35_p5 = scmp.ge.s32.totalorder %s3020_s12, 2 }
  0x10   : > { %s2998_s14 = scalar_select %p2486_p3, 1, 0 }
  0x11   : > { %p211_p6 = scmp.eq.s32.totalorder %s1990_s10, 3  ;;  %p1991_p7 = scmp.ge.s32.totalorder %s2389_s8, 1 }
  0x12   : > { %p218_p8 = scmp.lt.s32.totalorder %s2389_s8, 5  ;;  %s3022_s12 = smov (%p35_p5, %s3020_s12), 0 }
  0x13   : > { %2999 = sst [smem:[#allocation11_spill]] %s3022_s12  ;;  %p2496_p9 = por %p211_p6, %p210_p4 }
  0x14   : > { %p2500_p10 = pnand %p1991_p7, %p218_p8  ;;  %s191_s17 = ssub.s32 %s2385_s30, %s3022_s12 }
  0x15   : > { %s3000_s15 = scalar_select %p2496_p9, 1, 0 }
  0x16   : > { %s3001_s16 = scalar_select %p2500_p10, 1, 0 }
  0x17   : > { %p192_p11 = scmp.eq.s32.totalorder %s191_s17, 0  ;;  %p2172_p12 = pneg %p2500_p10 }
  0x18   : > { %p2508_p13 = scmp.eq.s32.totalorder %s1989_s9, 0  ;;  %s2391_s20 = smov [#allocation2]  }
  0x19   : > { %s2513_s19 = scalar_select %p192_p11, %s2369_s26, %s194_s13  }
  0x1a   : > { %s3002_s18 = scalar_select %p2508_p13, 1, 0 }
  0x1b   : > { %s242_s21 = sshll.u32 %s2391_s20, 4  ;;  %p2517_p0 = pnand %p2508_p13, %p2172_p12  ;;  %s243_s21 = int_to_ptr.vmem [resolvable:$true] %s242_s21 }
  0x1c   : > { %s3004_s5 = sld [smem:[#allocation12_spill]] }
  0x1d   : > { %p2265_p2 = pneg %p2517_p0 }
  0x22   : > { %s2263_s17 = scalar_lea.hbm %s3004_s5, 8192 }
  0x23   : > { %p2264_p1 = scmp.ne.s32.totalorder %s3004_s5, %s2263_s17  ;;  %p2270_p6 = scmp.lt.u32.totalorder %s2263_s17, %s3004_s5 }
  0x25   : > { %p2266_p4 = pnand %p2265_p2, %p2264_p1 }
  0x27   : > { %p2267_p5 = pneg %p2266_p4 }
  0x29   : > { %p2272_p7 = pnand %p2270_p6, %p2267_p5 }
  0x2b   : > { %2275 = shalt.err (!%p2272_p7)
}
  0x2c   : > { %s2276_s11 = scalar_lea.vmem %s243_s21, 8192  ;;  %p2284_p9 = scmp.lt.s32.totalorder %s243_s21, %s243_s21 }
  0x2d   : > { %p2277_p8 = scmp.ne.s32.totalorder %s243_s21, %s2276_s11  ;;  %p2285_p3 = scmp.lt.s32.totalorder %s2276_s11, %s2276_s11 }
  0x2f   : > { %p2279_p11 = pnand %p2277_p8, %p2265_p2  ;;  %p2286_p13 = por %p2285_p3, %p2284_p9 }
  0x31   : > { %p2280_p12 = pneg %p2279_p11 }
  0x33   : > { %p2287_p10 = pnand %p2286_p13, %p2280_p12 }
  0x35   : > { %2290 = shalt.err (!%p2287_p10)
}
  0x36   : > { %s2392_s12 = smov 512   ;;  %s2393_s23 = smov 32  }
  0x37   : > { %2175 = dma.hbm_to_vmem [thread:$0]  (!%p2517_p0), %s3004_s5, 8192, %s243_s21, [#allocation3], %s2392_s12, %s2392_s12, %s2393_s23  }
  0x38   : > { %p3005_p1 = scmp.ne.s32.totalorder %s3001_s16, 0 }
  0x39   : > { %p3006_p4 = scmp.ne.s32.totalorder (!%p3005_p1), %s3002_s18, 0 }
  0x3a   : > { %274 = sbr.rel (%p3005_p1) target bundleno = 899 (0x383), region = 48 }
  0x41   : > { %2352 = dma.done.wait (%p3006_p4), [#allocation3], 8192  }
  0x42   : > { %2354 = vsyncadd (%p3006_p4), [#allocation3], 4294959104  ;;  %s2991_s11 = sand.u32 1, %s2365_s25   ;;  %s1997_s22 = sshll.u32 %s2373_s27, 4  ;;  %vm410_vm0 = vcmask 1043456   ;;  %vm385_vm1 = vcmask 64512  }
  0x43   : > { %s2547_s17 = sshll.u32 %s2991_s11, 6  ;;  %p311_p3 = scmp.lt.s32.totalorder %s2377_s28, 1  ;;  %v337_v0 = vld [vmem:[%s2979_s1] sm:$0xf]  ;;  %v2260_v3 = vld [vmem:[%s2981_s3 + $0x8] sm:$0xff]   ;;  %v2261_v12 = vld [vmem:[%s2981_s3 + $0x10] sm:$0xff]  }
  0x44   : > { %p313_p9 = scmp.lt.s32.totalorder %s1997_s22, 31  ;;  %v2259_v1 = vld [vmem:[%s2981_s3] sm:$0xff]   ;;  %2165 = vmatprep.subr.msk.bf16.mxu0 %vm410_vm0, %v337_v0  ;;  %v412_v2 = vsel %vm410_vm0, %v337_v0, 0  ;;  %v2262_v13 = vld [vmem:[%s2981_s3 + $0x18] sm:$0xff]   ;;  %v2577_v16 = vld [vmem:[#allocation2 + $0x8] sm:$0xff]  ;;  %vm574_vm2 = vcmask 523264  }
  0x45   : > { %s312_s16 = scalar_select %p311_p3, %s2377_s28, 1  ;;  %2124 = vmatpush3.bf16.msra.mxu0 %v412_v2  ;;  %2141 = vmatprep.subr.bf16.mxu1 %v2259_v1  ;;  %v720_v14 = vld [vmem:[#allocation2] sm:$0xff]  ;;  %v2579_v19 = vld [vmem:[#allocation2 + $0x28] sm:$0xff] }
  0x46   : > { %s3024_s22 = smov (!%p313_p9, %s1997_s22), 31  ;;  %2142 = vmatpush3.bf16.msra.mxu1 %v2259_v1  ;;  %v724_v15 = vld [vmem:[#allocation2 + $0x20] sm:$0xff]  ;;  %v2032_v22 = vcombine.low %v2577_v16, %v2579_v19  ;;  %v2033_v23 = vcombine.high %v2577_v16, %v2579_v19  ;;  %v729_v55 = vld [vmem:[#allocation2 + $0x48] sm:$0xff]  ;;  %p2094_p10 = scmp.ne.s32.totalorder %s2373_s27, 0 }
  0x47   : > { %s1998_s21 = sshll.u32 %s312_s16, 5  ;;  %2143 = vmatprep.subr.bf16.mxu1 %v2260_v3  ;;  %v2030_v17 = vcombine.low %v720_v14, %v724_v15  ;;  %v2031_v18 = vcombine.high %v720_v14, %v724_v15  ;;  %v728_v20 = vld [vmem:[#allocation2 + $0x40] sm:$0xff]  ;;  %v733_v56 = vld [vmem:[#allocation2 + $0x68] sm:$0xff] }
  0x48   : > { %s316_s13 = sadd.s32 %s1998_s21, %s3024_s22  ;;  %v732_v21 = vld [vmem:[#allocation2 + $0x60] sm:$0xff]  ;;  %v2041_v62 = vcombine.high %v729_v55, %v733_v56  ;;  %v737_v1 = vld [vmem:[#allocation2 + $0x88] sm:$0xff] }
  0x49   : > { %s1999_s12 = sshll.u32 %s316_s13, 2  ;;  %v2039_v24 = vcombine.high %v728_v20, %v732_v21  ;;  %v736_v25 = vld [vmem:[#allocation2 + $0x80] sm:$0xff]  ;;  %1146 = vmatprep.subr.bf16.mxu0 %v2031_v18  ;;  %v2038_v27 = vcombine.low %v728_v20, %v732_v21  ;;  %v741_v2 = vld [vmem:[#allocation2 + $0xa8] sm:$0xff] }
  0x4a   : > { %s318_s5 = scalar_lea.vmem %s2978_s0, %s1999_s12  ;;  %2144 = vmatpush3.bf16.msra.mxu1 %v2260_v3  ;;  %v740_v26 = vld [vmem:[#allocation2 + $0xa0] sm:$0xff]  ;;  %v2048_v18 = vcombine.low %v737_v1, %v741_v2  ;;  %s2888_s12 = scalar_lea.vmem [#allocation5], %s2547_s17 }
  0x4b   : > { %v2251_v4 = vld [vmem:[%s318_s5] sm:$0xff]   ;;  %v2252_v5 = vld [vmem:[%s318_s5 + $0x8] sm:$0xff]   ;;  %v2253_v6 = vld [vmem:[%s318_s5 + $0x10] sm:$0xff]   ;;  %2145 = vmatprep.subr.bf16.mxu1 %v2261_v12  ;;  %v2047_v28 = vcombine.high %v736_v25, %v740_v26  ;;  %v2046_v31 = vcombine.low %v736_v25, %v740_v26 }
  0x4c   : > { %2125 = vmatprep.mubr.msk.bf16.mxu0 %vm385_vm1, %v2251_v4  ;;  %v2254_v7 = vld [vmem:[%s318_s5 + $0x18] sm:$0xff]   ;;  %v2255_v8 = vld [vmem:[%s318_s5 + $0x20] sm:$0xff]   ;;  %v2256_v9 = vld [vmem:[%s318_s5 + $0x28] sm:$0xff]  }
  0x4d   : > { %2126 = vmatmul.mubr.msk.bf16.vlgmr.msra.gmra.mrb[0].mxu0 %vm385_vm1, %v2252_v5  ;;  %v2257_v10 = vld [vmem:[%s318_s5 + $0x30] sm:$0xff]   ;;  %v2258_v11 = vld [vmem:[%s318_s5 + $0x38] sm:$0xff]   ;;  %v744_v29 = vld [vmem:[#allocation2 + $0xc0] sm:$0xff] }
  0x4e   : > { %2129 = vmatprep.mubr.msk.bf16.mxu0 %vm385_vm1, %v2253_v6  ;;  %2146 = vmatpush3.bf16.msra.mxu1 %v2261_v12  ;;  %v748_v30 = vld [vmem:[#allocation2 + $0xe0] sm:$0xff]  ;;  %v745_v12 = vld [vmem:[#allocation2 + $0xc8] sm:$0xff] }
  0x4f   : > { %2147 = vmatprep.subr.bf16.mxu1 %v2262_v13  ;;  %1147 = vmatpush1.bf16.msra.mxu0 %v2030_v17  ;;  %v2055_v32 = vcombine.high %v744_v29, %v748_v30  ;;  %v752_v33 = vld [vmem:[#allocation2 + $0x100] sm:$0xff]  ;;  %v2054_v35 = vcombine.low %v744_v29, %v748_v30 }
  0x50   : > { %1148 = vmatprep.subr.bf16.mxu0 %v2039_v24  ;;  %v756_v34 = vld [vmem:[#allocation2 + $0x120] sm:$0xff]  ;;  %v757_v24 = vld [vmem:[#allocation2 + $0x128] sm:$0xff] }
  0x51   : > { %v2063_v36 = vcombine.high %v752_v33, %v756_v34  ;;  %v760_v37 = vld [vmem:[#allocation2 + $0x140] sm:$0xff]  ;;  %v2062_v39 = vcombine.low %v752_v33, %v756_v34  ;;  %v761_v34 = vld [vmem:[#allocation2 + $0x148] sm:$0xff] }
  0x52   : > { %2148 = vmatpush3.bf16.msra.mxu1 %v2262_v13  ;;  %v764_v38 = vld [vmem:[#allocation2 + $0x160] sm:$0xff]  ;;  %v749_v13 = vld [vmem:[#allocation2 + $0xe8] sm:$0xff] }
  0x53   : > { %1259 = vmatprep.subr.bf16.mxu1 %v2033_v23  ;;  %1149 = vmatpush1.bf16.msra.mxu0 %v2038_v27  ;;  %v2071_v40 = vcombine.high %v760_v37, %v764_v38  ;;  %v2070_v41 = vcombine.low %v760_v37, %v764_v38  ;;  %v2588_v42 = vld [vmem:[%s2980_s2] ss:$0 sm:$0xff]  ;;  %v2057_v23 = vcombine.high %v745_v12, %v749_v13 }
  0x54   : > { %1150 = vmatprep.subr.bf16.mxu0 %v2047_v28  ;;  %v2056_v30 = vcombine.low %v745_v12, %v749_v13  ;;  %v727_v13 = vld [vmem:[#allocation2 + $0x38] sm:$0xff] }
  0x55   : > { %2130 = vmatmul.mubr.msk.bf16.gmra.mrb[4].mxu0 %vm385_vm1, %v2254_v7 }
  0x56   : > { %2133 = vmatprep.mubr.msk.bf16.mxu0 %vm385_vm1, %v2255_v8  ;;  %v2040_v8 = vcombine.low %v729_v55, %v733_v56  ;;  %v768_v56 = vld [vmem:[#allocation2 + $0x180] sm:$0xff] }
  0x57   : > { %1151 = vmatpush1.bf16.msra.mxu0 %v2046_v31 }
  0x58   : > { %1152 = vmatprep.subr.bf16.mxu0 %v2055_v32 }
  0x5b   : > { %1153 = vmatpush1.bf16.msra.mxu0 %v2054_v35  ;;  %v765_v35 = vld [vmem:[#allocation2 + $0x168] sm:$0xff] }
  0x5c   : > { %1154 = vmatprep.subr.bf16.mxu0 %v2063_v36 }
  0x5d   : > { %2134 = vmatmul.mubr.msk.bf16.gmra.mrb[8].mxu0 %vm385_vm1, %v2256_v9 }
  0x5e   : > { %2137 = vmatprep.mubr.msk.bf16.mxu0 %vm385_vm1, %v2257_v10  ;;  %v2049_v10 = vcombine.high %v737_v1, %v741_v2  ;;  %v777_v1 = vld [vmem:[#allocation2 + $0x1c8] sm:$0xff] }
  0x5f   : > { %1155 = vmatpush1.bf16.msra.mxu0 %v2062_v39 }
  0x60   : > { %1156 = vmatprep.subr.bf16.mxu0 %v2071_v40 }
  0x63   : > { %1157 = vmatpush1.bf16.msra.mxu0 %v2070_v41 }
  0x65   : > { %2138 = vmatmul.mubr.msk.bf16.gmra.mrb[12].mxu0 %vm385_vm1, %v2258_v11 }
 0x120   : > { %v2127_v43 = vpop.f32.mrb[0].mxu0 }
 0x121   : > { %v457_v44 = vadd.f32 %v2127_v43, %v2588_v42  ;;  %v448_v45 = vpop.f32.mrb[1].mxu0  ;;  %v2073_v43 = vcombine.high %v761_v34, %v765_v35 }
 0x122   : > { %v449_v46 = vadd.f32 %v2588_v42, %v448_v45  ;;  %v2128_v47 = vpop.f32.mrb[2].mxu0 }
 0x123   : > { %v460_v48 = vadd.f32 %v2128_v47, %v2588_v42  ;;  %v451_v49 = vpop.f32.mrb[3].mxu0  ;;  %v513_v51 = vmax.f32 %v457_v44, 0.0 }
 0x124   : > { %v452_v50 = vadd.f32 %v2588_v42, %v451_v49  ;;  %v511_v53 = vmax.f32 %v449_v46, 0.0 }
 0x125   : > { %v514_v52 = vmax.f32 %v460_v48, 0.0 }
 0x126   : > { %v512_v54 = vmax.f32 %v452_v50, 0.0 }
 0x127   : > { %v528_v57 = vpack.c.bf16 %v514_v52, %v513_v51  ;;  %v2072_v51 = vcombine.low %v761_v34, %v765_v35 }
 0x128   : > { %v2131_v58 = vpop.f32.mrb[4].mxu0  ;;  %v527_v59 = vpack.c.bf16 %v512_v54, %v511_v53 }
 0x129   : > { %v473_v60 = vadd.f32 %v2131_v58, %v2588_v42  ;;  %v464_v61 = vpop.f32.mrb[5].mxu0  ;;  %v769_v58 = vld [vmem:[#allocation2 + $0x188] sm:$0xff] }
 0x12a   : > { %v465_v63 = vadd.f32 %v2588_v42, %v464_v61  ;;  %2149 = vmatprep.mubr.msk.bf16.mxu1 %vm574_vm2, %v527_v59  ;;  %v2132_v0 = vpop.f32.mrb[6].mxu0 }
 0x12b   : > { %v517_v3 = vmax.f32 %v473_v60, 0.0  ;;  %v476_v4 = vadd.f32 %v2132_v0, %v2588_v42  ;;  %2150 = vmatmul.mubr.msk.bf16.vlgmr.msra.gmra.mrb[0].mxu1 %vm574_vm2, %v528_v57  ;;  %v467_v5 = vpop.f32.mrb[7].mxu0  ;;  %v772_v57 = vld [vmem:[#allocation2 + $0x1a0] sm:$0xff]  ;;  %v773_v60 = vld [vmem:[#allocation2 + $0x1a8] sm:$0xff] }
 0x12c   : > { %v515_v6 = vmax.f32 %v465_v63, 0.0  ;;  %v468_v7 = vadd.f32 %v2588_v42, %v467_v5  ;;  %1260 = vmatpush1.bf16.msra.mxu1 %v2032_v22  ;;  %v753_v22 = vld [vmem:[#allocation2 + $0x108] sm:$0xff]  ;;  %v2079_v59 = vcombine.high %v768_v56, %v772_v57  ;;  %v2078_v61 = vcombine.low %v768_v56, %v772_v57  ;;  %v776_v63 = vld [vmem:[#allocation2 + $0x1c0] sm:$0xff]  ;;  %v746_v57 = vld [vmem:[#allocation2 + $0xd0] sm:$0xff] }
 0x12d   : > { %v518_v9 = vmax.f32 %v476_v4, 0.0  ;;  %1261 = vmatprep.subr.bf16.mxu1 %v2041_v62  ;;  %v2065_v32 = vcombine.high %v753_v22, %v757_v24  ;;  %v2064_v39 = vcombine.low %v753_v22, %v757_v24  ;;  %v2080_v62 = vcombine.low %v769_v58, %v773_v60  ;;  %v780_v0 = vld [vmem:[#allocation2 + $0x1e0] sm:$0xff] }
 0x12e   : > { %v516_v11 = vmax.f32 %v468_v7, 0.0  ;;  %1158 = vmatprep.subr.bf16.mxu0 %v2079_v59  ;;  %v2087_v2 = vcombine.high %v776_v63, %v780_v0  ;;  %v2086_v4 = vcombine.low %v776_v63, %v780_v0  ;;  %v2394_v7 = vmov 0   ;;  %v750_v59 = vld [vmem:[#allocation2 + $0xf0] sm:$0xff] }
 0x12f   : > { %v530_v14 = vpack.c.bf16 %v518_v9, %v517_v3  ;;  %1159 = vmatpush1.bf16.msra.mxu0 %v2078_v61  ;;  %v781_v3 = vld [vmem:[#allocation2 + $0x1e8] sm:$0xff]  ;;  %1178 = vmatprep.mubr.bf16.mxu0 %v2394_v7  ;;  %v726_v9 = vld [vmem:[#allocation2 + $0x30] sm:$0xff]  ;;  %v751_v61 = vld [vmem:[#allocation2 + $0xf8] sm:$0xff] }
 0x130   : > { %v529_v15 = vpack.c.bf16 %v516_v11, %v515_v6  ;;  %v2135_v17 = vpop.f32.mrb[8].mxu0  ;;  %1262 = vmatpush1.bf16.msra.mxu1 %v2040_v8  ;;  %v2088_v5 = vcombine.low %v777_v1, %v781_v3  ;;  %v2089_v6 = vcombine.high %v777_v1, %v781_v3  ;;  %1160 = vmatprep.subr.bf16.mxu0 %v2087_v2  ;;  %v722_v8 = vld [vmem:[#allocation2 + $0x10] sm:$0xff] }
 0x131   : > { %v489_v20 = vadd.f32 %v2135_v17, %v2588_v42  ;;  %v480_v21 = vpop.f32.mrb[9].mxu0  ;;  %1263 = vmatprep.subr.bf16.mxu1 %v2049_v10  ;;  %v723_v10 = vld [vmem:[#allocation2 + $0x18] sm:$0xff]  ;;  %v2034_v11 = vcombine.low %v722_v8, %v726_v9  ;;  %v2035_v12 = vcombine.high %v722_v8, %v726_v9  ;;  %v2622_v17 = vld [vmem:[%s2982_s4] ss:$0 sm:$0xff] }
 0x132   : > { %2153 = vmatprep.mubr.msk.bf16.mxu1 %vm574_vm2, %v529_v15  ;;  %v481_v16 = vadd.f32 %v2588_v42, %v480_v21  ;;  %v2136_v19 = vpop.f32.mrb[10].mxu0  ;;  %v2037_v15 = vcombine.high %v723_v10, %v727_v13 }
 0x133   : > { %2154 = vmatmul.mubr.msk.bf16.gmra.mrb[4].mxu1 %vm574_vm2, %v530_v14  ;;  %v521_v25 = vmax.f32 %v489_v20, 0.0  ;;  %v492_v26 = vadd.f32 %v2136_v19, %v2588_v42  ;;  %v483_v27 = vpop.f32.mrb[11].mxu0  ;;  %1161 = vmatpush1.bf16.msra.mxu0 %v2086_v4  ;;  %v2036_v14 = vcombine.low %v723_v10, %v727_v13  ;;  %v2059_v4 = vcombine.high %v746_v57, %v750_v59  ;;  %v758_v10 = vld [vmem:[#allocation2 + $0x130] sm:$0xff] }
 0x134   : > { %v519_v28 = vmax.f32 %v481_v16, 0.0  ;;  %v484_v29 = vadd.f32 %v2588_v42, %v483_v27  ;;  %1264 = vmatpush1.bf16.msra.mxu1 %v2048_v18  ;;  %1372 = vmatprep.subr.bf16.mxu0 %v2035_v12  ;;  %v730_v27 = vld [vmem:[#allocation2 + $0x50] sm:$0xff]  ;;  %v759_v12 = vld [vmem:[#allocation2 + $0x138] sm:$0xff] }
 0x135   : > { %v522_v31 = vmax.f32 %v492_v26, 0.0  ;;  %1265 = vmatprep.subr.bf16.mxu1 %v2057_v23 }
 0x136   : > { %v520_v33 = vmax.f32 %v484_v29, 0.0 }
 0x137   : > { %v532_v36 = vpack.c.bf16 %v522_v31, %v521_v25  ;;  %v731_v31 = vld [vmem:[#allocation2 + $0x58] sm:$0xff] }
 0x138   : > { %v531_v37 = vpack.c.bf16 %v520_v33, %v519_v28  ;;  %v2139_v38 = vpop.f32.mrb[12].mxu0  ;;  %1266 = vmatpush1.bf16.msra.mxu1 %v2056_v30  ;;  %v734_v30 = vld [vmem:[#allocation2 + $0x70] sm:$0xff] }
 0x139   : > { %v505_v40 = vadd.f32 %v2139_v38, %v2588_v42  ;;  %v496_v41 = vpop.f32.mrb[13].mxu0  ;;  %1267 = vmatprep.subr.bf16.mxu1 %v2065_v32  ;;  %v735_v32 = vld [vmem:[#allocation2 + $0x78] sm:$0xff] }
 0x13a   : > { %2157 = vmatprep.mubr.msk.bf16.mxu1 %vm574_vm2, %v531_v37  ;;  %v497_v44 = vadd.f32 %v2588_v42, %v496_v41  ;;  %v2140_v45 = vpop.f32.mrb[14].mxu0  ;;  %v742_v41 = vld [vmem:[#allocation2 + $0xb0] sm:$0xff] }
 0x13b   : > { %2158 = vmatmul.mubr.msk.bf16.gmra.mrb[8].mxu1 %vm574_vm2, %v532_v36  ;;  %v525_v46 = vmax.f32 %v505_v40, 0.0  ;;  %v508_v47 = vadd.f32 %v2140_v45, %v2588_v42  ;;  %v499_v48 = vpop.f32.mrb[15].mxu0  ;;  %v738_v36 = vld [vmem:[#allocation2 + $0x90] sm:$0xff]  ;;  %v2045_v40 = vcombine.high %v731_v31, %v735_v32 }
 0x13c   : > { %v523_v49 = vmax.f32 %v497_v44, 0.0  ;;  %v500_v50 = vadd.f32 %v2588_v42, %v499_v48  ;;  %1268 = vmatpush1.bf16.msra.mxu1 %v2064_v39  ;;  %v2081_v42 = vcombine.high %v769_v58, %v773_v60  ;;  %v2043_v39 = vcombine.high %v730_v27, %v734_v30  ;;  %v743_v44 = vld [vmem:[#allocation2 + $0xb8] sm:$0xff] }
 0x13d   : > { %v526_v52 = vmax.f32 %v508_v47, 0.0  ;;  %1269 = vmatprep.subr.bf16.mxu1 %v2073_v43  ;;  %v739_v43 = vld [vmem:[#allocation2 + $0x98] sm:$0xff]  ;;  %v2050_v0 = vcombine.low %v738_v36, %v742_v41 }
 0x13e   : > { %v524_v53 = vmax.f32 %v500_v50, 0.0  ;;  %v2042_v50 = vcombine.low %v730_v27, %v734_v30  ;;  %v747_v60 = vld [vmem:[#allocation2 + $0xd8] sm:$0xff]  ;;  %v2052_v1 = vcombine.low %v739_v43, %v743_v44 }
 0x13f   : > { %v534_v54 = vpack.c.bf16 %v526_v52, %v525_v46  ;;  %v763_v27 = vld [vmem:[#allocation2 + $0x158] sm:$0xff] }
 0x140   : > { %v533_v55 = vpack.c.bf16 %v524_v53, %v523_v49  ;;  %1270 = vmatpush1.bf16.msra.mxu1 %v2072_v51  ;;  %v2044_v51 = vcombine.low %v731_v31, %v735_v32 }
 0x141   : > { %1271 = vmatprep.subr.bf16.mxu1 %v2081_v42 }
 0x142   : > { %2161 = vmatprep.mubr.msk.bf16.mxu1 %vm574_vm2, %v533_v55  ;;  %v2053_v55 = vcombine.high %v739_v43, %v743_v44  ;;  %v774_v44 = vld [vmem:[#allocation2 + $0x1b0] sm:$0xff] }
 0x143   : > { %2162 = vmatmul.mubr.msk.bf16.gmra.mrb[12].mxu1 %vm574_vm2, %v534_v54  ;;  %v2051_v54 = vcombine.high %v738_v36, %v742_v41 }
 0x144   : > { %1272 = vmatpush1.bf16.msra.mxu1 %v2080_v62  ;;  %1291 = vmatprep.mubr.bf16.mxu1 %v2394_v7 }
 0x145   : > { %1273 = vmatprep.subr.bf16.mxu1 %v2089_v6  ;;  %v754_v6 = vld [vmem:[#allocation2 + $0x110] sm:$0xff] }
 0x146   : > { %v2066_v32 = vcombine.low %v754_v6, %v758_v10 }
 0x148   : > { %1274 = vmatpush1.bf16.msra.mxu1 %v2088_v5  ;;  %v2061_v5 = vcombine.high %v747_v60, %v751_v61 }
 0x149   : > { %1485 = vmatprep.subr.bf16.mxu1 %v2037_v15 }
 0x1fe   : > { %v2151_v18 = vpop.f32.mrb[0].mxu1 }
 0x1ff   : > { %v642_v20 = vadd.f32 %v2151_v18, %v2622_v17  ;;  %v633_v21 = vpop.f32.mrb[1].mxu1 }
 0x200   : > { %v634_v23 = vadd.f32 %v2622_v17, %v633_v21  ;;  %v2152_v16 = vpop.f32.mrb[2].mxu1  ;;  %v2058_v21 = vcombine.low %v746_v57, %v750_v59  ;;  %v778_v57 = vld [vmem:[#allocation2 + $0x1d0] sm:$0xff] }
 0x201   : > { %v645_v19 = vadd.f32 %v2152_v16, %v2622_v17  ;;  %v636_v22 = vpop.f32.mrb[3].mxu1  ;;  %v698_v25 = vmax.f32 %v642_v20, 0.0  ;;  %v782_v59 = vld [vmem:[#allocation2 + $0x1f0] sm:$0xff] }
 0x202   : > { %v637_v24 = vadd.f32 %v2622_v17, %v636_v22  ;;  %v696_v28 = vmax.f32 %v634_v23, 0.0  ;;  %v2060_v23 = vcombine.low %v747_v60, %v751_v61  ;;  %v779_v60 = vld [vmem:[#allocation2 + $0x1d8] sm:$0xff] }
 0x203   : > { %v699_v26 = vmax.f32 %v645_v19, 0.0  ;;  %v2067_v19 = vcombine.high %v754_v6, %v758_v10  ;;  %v783_v61 = vld [vmem:[#allocation2 + $0x1f8] sm:$0xff]  ;;  %v2719_v6 = vld [vmem:[%s2984_s6] sm:$0xff] }
 0x204   : > { %v697_v29 = vmax.f32 %v637_v24, 0.0  ;;  %v762_v24 = vld [vmem:[#allocation2 + $0x150] sm:$0xff] }
 0x205   : > { %v2628_v33 = vpack.c.bf16 %v699_v26, %v698_v25  ;;  %v766_v26 = vld [vmem:[#allocation2 + $0x170] sm:$0xff] }
 0x206   : > { %v2630_v34 = vpack.c.bf16 %v697_v29, %v696_v28  ;;  %v2155_v35 = vpop.f32.mrb[4].mxu1  ;;  %v767_v28 = vld [vmem:[#allocation2 + $0x178] sm:$0xff] }
 0x207   : > { %v658_v37 = vadd.f32 %v2155_v35, %v2622_v17  ;;  %v649_v38 = vpop.f32.mrb[5].mxu1 }
 0x208   : > { %v650_v45 = vadd.f32 %v2622_v17, %v649_v38  ;;  %1179 = vmatmul.mubr.bf16.vlgmr.msra.gmra.mrb[16].mxu0 %v2630_v34  ;;  %1292 = vmatmul.mubr.bf16.vlgmr.msra.gmra.mrb[16].mxu1 %v2630_v34  ;;  %v2156_v46 = vpop.f32.mrb[6].mxu1  ;;  %v2075_v38 = vcombine.high %v762_v24, %v766_v26 }
 0x209   : > { %v702_v47 = vmax.f32 %v658_v37, 0.0  ;;  %1373 = vmatpush1.bf16.msra.mxu0 %v2034_v11  ;;  %1486 = vmatpush1.bf16.msra.mxu1 %v2036_v14  ;;  %v661_v48 = vadd.f32 %v2156_v46, %v2622_v17  ;;  %v652_v49 = vpop.f32.mrb[7].mxu1  ;;  %v755_v11 = vld [vmem:[#allocation2 + $0x118] sm:$0xff] }
 0x20a   : > { %v700_v52 = vmax.f32 %v650_v45, 0.0  ;;  %v653_v53 = vadd.f32 %v2622_v17, %v652_v49  ;;  %1188 = vmatprep.mubr.bf16.mxu0 %v2394_v7  ;;  %1301 = vmatprep.mubr.bf16.mxu1 %v2394_v7  ;;  %v2069_v22 = vcombine.high %v755_v11, %v759_v12  ;;  %v2068_v35 = vcombine.low %v755_v11, %v759_v12  ;;  %v771_v45 = vld [vmem:[#allocation2 + $0x198] sm:$0xff] }
 0x20b   : > { %v703_v56 = vmax.f32 %v661_v48, 0.0  ;;  %1374 = vmatprep.subr.bf16.mxu0 %v2043_v39  ;;  %1487 = vmatprep.subr.bf16.mxu1 %v2045_v40  ;;  %v2077_v39 = vcombine.high %v763_v27, %v767_v28  ;;  %v770_v40 = vld [vmem:[#allocation2 + $0x190] sm:$0xff]  ;;  %v775_v46 = vld [vmem:[#allocation2 + $0x1b8] sm:$0xff] }
 0x20c   : > { %v701_v58 = vmax.f32 %v653_v53, 0.0  ;;  %v2076_v53 = vcombine.low %v763_v27, %v767_v28 }
 0x20d   : > { %v2640_v62 = vpack.c.bf16 %v703_v56, %v702_v47  ;;  %1375 = vmatpush1.bf16.msra.mxu0 %v2042_v50  ;;  %1488 = vmatpush1.bf16.msra.mxu1 %v2044_v51  ;;  %v2085_v56 = vcombine.high %v771_v45, %v775_v46 }
 0x20e   : > { %v2642_v42 = vpack.c.bf16 %v701_v58, %v700_v52  ;;  %v2159_v63 = vpop.f32.mrb[8].mxu1  ;;  %1376 = vmatprep.subr.bf16.mxu0 %v2051_v54  ;;  %1489 = vmatprep.subr.bf16.mxu1 %v2053_v55  ;;  %v2074_v52 = vcombine.low %v762_v24, %v766_v26  ;;  %v2083_v55 = vcombine.high %v770_v40, %v774_v44 }
 0x20f   : > { %v674_v2 = vadd.f32 %v2159_v63, %v2622_v17  ;;  %v665_v3 = vpop.f32.mrb[9].mxu1 }
 0x210   : > { %1189 = vmatmul.mubr.bf16.gmra.mrb[20].mxu0 %v2628_v33  ;;  %1302 = vmatmul.mubr.bf16.gmra.mrb[20].mxu1 %v2628_v33  ;;  %v666_v8 = vadd.f32 %v2622_v17, %v665_v3  ;;  %v2160_v9 = vpop.f32.mrb[10].mxu1  ;;  %v2093_v3 = vcombine.high %v779_v60, %v783_v61 }
 0x211   : > { %v706_v13 = vmax.f32 %v674_v2, 0.0  ;;  %1198 = vmatprep.mubr.bf16.mxu0 %v2394_v7  ;;  %1311 = vmatprep.mubr.bf16.mxu1 %v2394_v7  ;;  %v677_v14 = vadd.f32 %v2160_v9, %v2622_v17  ;;  %v668_v15 = vpop.f32.mrb[11].mxu1  ;;  %v2084_v2 = vcombine.low %v771_v45, %v775_v46 }
 0x212   : > { %v704_v18 = vmax.f32 %v666_v8, 0.0  ;;  %1377 = vmatpush1.bf16.msra.mxu0 %v2050_v0  ;;  %1490 = vmatpush1.bf16.msra.mxu1 %v2052_v1  ;;  %v669_v20 = vadd.f32 %v2622_v17, %v668_v15  ;;  %v2082_v1 = vcombine.low %v770_v40, %v774_v44 }
 0x213   : > { %v707_v16 = vmax.f32 %v677_v14, 0.0  ;;  %1378 = vmatprep.subr.bf16.mxu0 %v2059_v4  ;;  %1491 = vmatprep.subr.bf16.mxu1 %v2061_v5  ;;  %v2090_v4 = vcombine.low %v778_v57, %v782_v59  ;;  %v2092_v5 = vcombine.low %v779_v60, %v783_v61 }
 0x214   : > { %v705_v25 = vmax.f32 %v669_v20, 0.0 }
 0x215   : > { %v2652_v29 = vpack.c.bf16 %v707_v16, %v706_v13 }
 0x216   : > { %v2654_v30 = vpack.c.bf16 %v705_v25, %v704_v18  ;;  %1379 = vmatpush1.bf16.msra.mxu0 %v2058_v21  ;;  %1492 = vmatpush1.bf16.msra.mxu1 %v2060_v23  ;;  %v2163_v31 = vpop.f32.mrb[12].mxu1 }
 0x217   : > { %v690_v36 = vadd.f32 %v2163_v31, %v2622_v17  ;;  %1380 = vmatprep.subr.bf16.mxu0 %v2067_v19  ;;  %1493 = vmatprep.subr.bf16.mxu1 %v2069_v22  ;;  %v681_v37 = vpop.f32.mrb[13].mxu1 }
 0x218   : > { %1199 = vmatmul.mubr.bf16.gmra.mrb[24].mxu0 %v2642_v42  ;;  %1312 = vmatmul.mubr.bf16.gmra.mrb[24].mxu1 %v2642_v42  ;;  %v682_v41 = vadd.f32 %v2622_v17, %v681_v37  ;;  %v2164_v43 = vpop.f32.mrb[14].mxu1 }
 0x219   : > { %1208 = vmatprep.mubr.bf16.mxu0 %v2394_v7  ;;  %1321 = vmatprep.mubr.bf16.mxu1 %v2394_v7  ;;  %v710_v47 = vmax.f32 %v690_v36, 0.0  ;;  %v693_v48 = vadd.f32 %v2164_v43, %v2622_v17  ;;  %v684_v49 = vpop.f32.mrb[15].mxu1 }
 0x21a   : > { %v708_v50 = vmax.f32 %v682_v41, 0.0  ;;  %1381 = vmatpush1.bf16.msra.mxu0 %v2066_v32  ;;  %1494 = vmatpush1.bf16.msra.mxu1 %v2068_v35  ;;  %v685_v51 = vadd.f32 %v2622_v17, %v684_v49  ;;  %v2091_v17 = vcombine.high %v778_v57, %v782_v59 }
 0x21b   : > { %v711_v54 = vmax.f32 %v693_v48, 0.0  ;;  %1382 = vmatprep.subr.bf16.mxu0 %v2075_v38  ;;  %1495 = vmatprep.subr.bf16.mxu1 %v2077_v39 }
 0x21c   : > { %v709_v58 = vmax.f32 %v685_v51, 0.0 }
 0x21d   : > { %v2664_v63 = vpack.c.bf16 %v711_v54, %v710_v47 }
 0x21e   : > { %v718_v0 = vpack.c.bf16 %v709_v58, %v708_v50  ;;  %1383 = vmatpush1.bf16.msra.mxu0 %v2074_v52  ;;  %1496 = vmatpush1.bf16.msra.mxu1 %v2076_v53 }
 0x21f   : > { %1384 = vmatprep.subr.bf16.mxu0 %v2083_v55  ;;  %1497 = vmatprep.subr.bf16.mxu1 %v2085_v56 }
 0x220   : > { %1209 = vmatmul.mubr.bf16.gmra.mrb[28].mxu0 %v2640_v62  ;;  %1322 = vmatmul.mubr.bf16.gmra.mrb[28].mxu1 %v2640_v62 }
 0x221   : > { %1218 = vmatprep.mubr.bf16.mxu0 %v2394_v7  ;;  %1331 = vmatprep.mubr.bf16.mxu1 %v2394_v7 }
 0x222   : > { %1385 = vmatpush1.bf16.msra.mxu0 %v2082_v1  ;;  %1498 = vmatpush1.bf16.msra.mxu1 %v2084_v2 }
 0x223   : > { %1386 = vmatprep.subr.bf16.mxu0 %v2091_v17  ;;  %1499 = vmatprep.subr.bf16.mxu1 %v2093_v3 }
 0x226   : > { %1387 = vmatpush1.bf16.msra.mxu0 %v2090_v4  ;;  %1500 = vmatpush1.bf16.msra.mxu1 %v2092_v5 }
 0x228   : > { %1219 = vmatmul.mubr.bf16.gmra.mrb[32].mxu0 %v2654_v30  ;;  %1332 = vmatmul.mubr.bf16.gmra.mrb[32].mxu1 %v2654_v30 }
 0x229   : > { %1228 = vmatprep.mubr.bf16.mxu0 %v2394_v7  ;;  %1341 = vmatprep.mubr.bf16.mxu1 %v2394_v7 }
 0x230   : > { %1229 = vmatmul.mubr.bf16.gmra.mrb[36].mxu0 %v2652_v29  ;;  %1342 = vmatmul.mubr.bf16.gmra.mrb[36].mxu1 %v2652_v29 }
 0x231   : > { %1238 = vmatprep.mubr.bf16.mxu0 %v2394_v7  ;;  %1351 = vmatprep.mubr.bf16.mxu1 %v2394_v7 }
 0x238   : > { %1239 = vmatmul.mubr.bf16.gmra.mrb[40].mxu0 %v718_v0  ;;  %1352 = vmatmul.mubr.bf16.gmra.mrb[40].mxu1 %v718_v0 }
 0x239   : > { %1248 = vmatprep.mubr.bf16.mxu0 %v2394_v7  ;;  %1361 = vmatprep.mubr.bf16.mxu1 %v2394_v7 }
 0x240   : > { %1249 = vmatmul.mubr.bf16.gmra.mrb[44].mxu0 %v2664_v63  ;;  %1362 = vmatmul.mubr.bf16.gmra.mrb[44].mxu1 %v2664_v63 }
 0x241   : > { %1404 = vmatprep.mubr.bf16.mxu0 %v2394_v7  ;;  %1517 = vmatprep.mubr.bf16.mxu1 %v2394_v7 }
 0x248   : > { %1405 = vmatmul.mubr.bf16.vlgmr.msra.gmra.mrb[48].mxu0 %v2630_v34  ;;  %1518 = vmatmul.mubr.bf16.vlgmr.msra.gmra.mrb[48].mxu1 %v2630_v34 }
 0x249   : > { %1414 = vmatprep.mubr.bf16.mxu0 %v2394_v7  ;;  %1527 = vmatprep.mubr.bf16.mxu1 %v2394_v7 }
 0x250   : > { %1415 = vmatmul.mubr.bf16.gmra.mrb[52].mxu0 %v2628_v33  ;;  %1528 = vmatmul.mubr.bf16.gmra.mrb[52].mxu1 %v2628_v33  ;;  %v786_v33 = vlaneseq }
 0x251   : > { %1424 = vmatprep.mubr.bf16.mxu0 %v2394_v7  ;;  %1537 = vmatprep.mubr.bf16.mxu1 %v2394_v7 }
 0x252   : > { %v2712_v34 = vshrl.u32 %v786_v33, 7 }
 0x254   : > { %v792_v8 = vsub.s32 1, %v2712_v34 }
 0x256   : > { %v2730_v11 = vrot.slane %v2719_v6, %v792_v8 }
 0x258   : > { %1425 = vmatmul.mubr.bf16.gmra.mrb[56].mxu0 %v2642_v42  ;;  %1538 = vmatmul.mubr.bf16.gmra.mrb[56].mxu1 %v2642_v42  ;;  %v796_v42 = vsub.s32 2, %v2712_v34 }
 0x259   : > { %1434 = vmatprep.mubr.bf16.mxu0 %v2394_v7  ;;  %1547 = vmatprep.mubr.bf16.mxu1 %v2394_v7 }
 0x25a   : > { %v2727_v10 = vrot.slane %v2719_v6, %v796_v42 }
 0x260   : > { %1435 = vmatmul.mubr.bf16.gmra.mrb[60].mxu0 %v2640_v62  ;;  %1548 = vmatmul.mubr.bf16.gmra.mrb[60].mxu1 %v2640_v62  ;;  %v788_v62 = vsub.s32 0, %v2712_v34 }
 0x261   : > { %1444 = vmatprep.mubr.bf16.mxu0 %v2394_v7  ;;  %1557 = vmatprep.mubr.bf16.mxu1 %v2394_v7 }
 0x262   : > { %v2724_v9 = vrot.slane %v2719_v6, %v788_v62 }
 0x268   : > { %1445 = vmatmul.mubr.bf16.gmra.mrb[64].mxu0 %v2654_v30  ;;  %1558 = vmatmul.mubr.bf16.gmra.mrb[64].mxu1 %v2654_v30 }
 0x269   : > { %1454 = vmatprep.mubr.bf16.mxu0 %v2394_v7  ;;  %1567 = vmatprep.mubr.bf16.mxu1 %v2394_v7 }
 0x270   : > { %1455 = vmatmul.mubr.bf16.gmra.mrb[68].mxu0 %v2652_v29  ;;  %1568 = vmatmul.mubr.bf16.gmra.mrb[68].mxu1 %v2652_v29 }
 0x271   : > { %1464 = vmatprep.mubr.bf16.mxu0 %v2394_v7  ;;  %1577 = vmatprep.mubr.bf16.mxu1 %v2394_v7 }
 0x278   : > { %1465 = vmatmul.mubr.bf16.gmra.mrb[72].mxu0 %v718_v0  ;;  %1578 = vmatmul.mubr.bf16.gmra.mrb[72].mxu1 %v718_v0 }
 0x279   : > { %1474 = vmatprep.mubr.bf16.mxu0 %v2394_v7  ;;  %1587 = vmatprep.mubr.bf16.mxu1 %v2394_v7  ;;  %v800_v7 = vsub.s32 3, %v2712_v34 }
 0x27b   : > { %v2733_v12 = vrot.slane %v2719_v6, %v800_v7 }
 0x280   : > { %1475 = vmatmul.mubr.bf16.gmra.mrb[76].mxu0 %v2664_v63  ;;  %1588 = vmatmul.mubr.bf16.gmra.mrb[76].mxu1 %v2664_v63 }
 0x2db   : > { %v1180_v13 = vpop.f32.mrb[16].mxu0  ;;  %v1293_v14 = vpop.f32.mrb[16].mxu1 }
 0x2dc   : > { %v1181_v15 = vadd.f32 %v1180_v13, %v2724_v9  ;;  %v1294_v18 = vadd.f32 %v1293_v14, %v2727_v10  ;;  %v1182_v20 = vpop.f32.mrb[17].mxu0  ;;  %v1295_v21 = vpop.f32.mrb[17].mxu1 }
 0x2dd   : > { %v1183_v23 = vadd.f32 %v1182_v20, %v2730_v11  ;;  %v1296_v16 = vadd.f32 %v1295_v21, %v2733_v12  ;;  %v1184_v19 = vpop.f32.mrb[18].mxu0  ;;  %v1297_v22 = vpop.f32.mrb[18].mxu1 }
 0x2de   : > { %v1185_v24 = vadd.f32 %v1184_v19, %v2724_v9  ;;  %v1298_v25 = vadd.f32 %v1297_v22, %v2727_v10  ;;  %v1186_v26 = vpop.f32.mrb[19].mxu0  ;;  %v1299_v27 = vpop.f32.mrb[19].mxu1  ;;  %v1598_v30 = vmax.f32 %v1181_v15, 0.0  ;;  %v1600_v31 = vmax.f32 %v1294_v18, 0.0 }
 0x2df   : > { %v1187_v28 = vadd.f32 %v1186_v26, %v2730_v11  ;;  %v1300_v29 = vadd.f32 %v1299_v27, %v2733_v12  ;;  %v1599_v36 = vmax.f32 %v1183_v23, 0.0  ;;  %v1601_v37 = vmax.f32 %v1296_v16, 0.0 }
 0x2e0   : > { %v1606_v32 = vmax.f32 %v1185_v24, 0.0  ;;  %v1608_v35 = vmax.f32 %v1298_v25, 0.0 }
 0x2e1   : > { %v1607_v38 = vmax.f32 %v1187_v28, 0.0  ;;  %v1609_v39 = vmax.f32 %v1300_v29, 0.0 }
 0x2e2   : > { %v1726_v40 = vmax.f32 %v1598_v30, %v1606_v32  ;;  %v1756_v41 = vmax.f32 %v1600_v31, %v1608_v35 }
 0x2e3   : > { %v1741_v43 = vmax.f32 %v1599_v36, %v1607_v38  ;;  %v1771_v44 = vmax.f32 %v1601_v37, %v1609_v39  ;;  %v1190_v45 = vpop.f32.mrb[20].mxu0  ;;  %v1303_v46 = vpop.f32.mrb[20].mxu1 }
 0x2e4   : > { %v1191_v47 = vadd.f32 %v1190_v45, %v2724_v9  ;;  %v1304_v48 = vadd.f32 %v1303_v46, %v2727_v10  ;;  %v1192_v49 = vpop.f32.mrb[21].mxu0  ;;  %v1305_v50 = vpop.f32.mrb[21].mxu1 }
 0x2e5   : > { %v1193_v51 = vadd.f32 %v1192_v49, %v2730_v11  ;;  %v1306_v52 = vadd.f32 %v1305_v50, %v2733_v12  ;;  %v1194_v53 = vpop.f32.mrb[22].mxu0  ;;  %v1307_v54 = vpop.f32.mrb[22].mxu1 }
 0x2e6   : > { %v1614_v55 = vmax.f32 %v1191_v47, 0.0  ;;  %v1616_v56 = vmax.f32 %v1304_v48, 0.0  ;;  %v1195_v57 = vadd.f32 %v1194_v53, %v2724_v9  ;;  %v1308_v58 = vadd.f32 %v1307_v54, %v2727_v10  ;;  %v1196_v59 = vpop.f32.mrb[23].mxu0  ;;  %v1309_v60 = vpop.f32.mrb[23].mxu1 }
 0x2e7   : > { %v1615_v61 = vmax.f32 %v1193_v51, 0.0  ;;  %v1617_v63 = vmax.f32 %v1306_v52, 0.0  ;;  %v1197_v0 = vadd.f32 %v1196_v59, %v2730_v11  ;;  %v1310_v1 = vadd.f32 %v1309_v60, %v2733_v12 }
 0x2e8   : > { %v1727_v2 = vmax.f32 %v1726_v40, %v1614_v55  ;;  %v1757_v17 = vmax.f32 %v1756_v41, %v1616_v56  ;;  %v1622_v3 = vmax.f32 %v1195_v57, 0.0  ;;  %v1624_v4 = vmax.f32 %v1308_v58, 0.0 }
 0x2e9   : > { %v1742_v5 = vmax.f32 %v1741_v43, %v1615_v61  ;;  %v1772_v33 = vmax.f32 %v1771_v44, %v1617_v63  ;;  %v1623_v62 = vmax.f32 %v1197_v0, 0.0  ;;  %v1625_v42 = vmax.f32 %v1310_v1, 0.0 }
 0x2ea   : > { %v1728_v8 = vmax.f32 %v1727_v2, %v1622_v3  ;;  %v1758_v7 = vmax.f32 %v1757_v17, %v1624_v4 }
 0x2eb   : > { %v1743_v13 = vmax.f32 %v1742_v5, %v1623_v62  ;;  %v1773_v14 = vmax.f32 %v1772_v33, %v1625_v42  ;;  %v1200_v15 = vpop.f32.mrb[24].mxu0  ;;  %v1313_v18 = vpop.f32.mrb[24].mxu1 }
 0x2ec   : > { %v1201_v20 = vadd.f32 %v1200_v15, %v2724_v9  ;;  %v1314_v21 = vadd.f32 %v1313_v18, %v2727_v10  ;;  %v1202_v23 = vpop.f32.mrb[25].mxu0  ;;  %v1315_v16 = vpop.f32.mrb[25].mxu1 }
 0x2ed   : > { %v1203_v19 = vadd.f32 %v1202_v23, %v2730_v11  ;;  %v1316_v22 = vadd.f32 %v1315_v16, %v2733_v12  ;;  %v1204_v24 = vpop.f32.mrb[26].mxu0  ;;  %v1317_v25 = vpop.f32.mrb[26].mxu1 }
 0x2ee   : > { %v1630_v26 = vmax.f32 %v1201_v20, 0.0  ;;  %v1632_v27 = vmax.f32 %v1314_v21, 0.0  ;;  %v1205_v28 = vadd.f32 %v1204_v24, %v2724_v9  ;;  %v1318_v29 = vadd.f32 %v1317_v25, %v2727_v10  ;;  %v1206_v30 = vpop.f32.mrb[27].mxu0  ;;  %v1319_v31 = vpop.f32.mrb[27].mxu1 }
 0x2ef   : > { %v1631_v32 = vmax.f32 %v1203_v19, 0.0  ;;  %v1633_v35 = vmax.f32 %v1316_v22, 0.0  ;;  %v1207_v36 = vadd.f32 %v1206_v30, %v2730_v11  ;;  %v1320_v37 = vadd.f32 %v1319_v31, %v2733_v12 }
 0x2f0   : > { %v1729_v38 = vmax.f32 %v1728_v8, %v1630_v26  ;;  %v1759_v39 = vmax.f32 %v1758_v7, %v1632_v27  ;;  %v1638_v40 = vmax.f32 %v1205_v28, 0.0  ;;  %v1640_v41 = vmax.f32 %v1318_v29, 0.0 }
 0x2f1   : > { %v1744_v43 = vmax.f32 %v1743_v13, %v1631_v32  ;;  %v1774_v44 = vmax.f32 %v1773_v14, %v1633_v35  ;;  %v1639_v45 = vmax.f32 %v1207_v36, 0.0  ;;  %v1641_v46 = vmax.f32 %v1320_v37, 0.0 }
 0x2f2   : > { %v1730_v47 = vmax.f32 %v1729_v38, %v1638_v40  ;;  %v1760_v48 = vmax.f32 %v1759_v39, %v1640_v41 }
 0x2f3   : > { %v1745_v49 = vmax.f32 %v1744_v43, %v1639_v45  ;;  %v1775_v50 = vmax.f32 %v1774_v44, %v1641_v46  ;;  %v1210_v51 = vpop.f32.mrb[28].mxu0  ;;  %v1323_v52 = vpop.f32.mrb[28].mxu1 }
 0x2f4   : > { %v1211_v53 = vadd.f32 %v1210_v51, %v2724_v9  ;;  %v1324_v54 = vadd.f32 %v1323_v52, %v2727_v10  ;;  %v1212_v55 = vpop.f32.mrb[29].mxu0  ;;  %v1325_v56 = vpop.f32.mrb[29].mxu1 }
 0x2f5   : > { %v1213_v57 = vadd.f32 %v1212_v55, %v2730_v11  ;;  %v1326_v58 = vadd.f32 %v1325_v56, %v2733_v12  ;;  %v1214_v59 = vpop.f32.mrb[30].mxu0  ;;  %v1327_v60 = vpop.f32.mrb[30].mxu1 }
 0x2f6   : > { %v1646_v61 = vmax.f32 %v1211_v53, 0.0  ;;  %v1648_v63 = vmax.f32 %v1324_v54, 0.0  ;;  %v1215_v0 = vadd.f32 %v1214_v59, %v2724_v9  ;;  %v1328_v1 = vadd.f32 %v1327_v60, %v2727_v10  ;;  %v1216_v2 = vpop.f32.mrb[31].mxu0  ;;  %v1329_v17 = vpop.f32.mrb[31].mxu1 }
 0x2f7   : > { %v1647_v3 = vmax.f32 %v1213_v57, 0.0  ;;  %v1649_v4 = vmax.f32 %v1326_v58, 0.0  ;;  %v1217_v5 = vadd.f32 %v1216_v2, %v2730_v11  ;;  %v1330_v33 = vadd.f32 %v1329_v17, %v2733_v12 }
 0x2f8   : > { %v1731_v62 = vmax.f32 %v1730_v47, %v1646_v61  ;;  %v1761_v42 = vmax.f32 %v1760_v48, %v1648_v63  ;;  %v1654_v8 = vmax.f32 %v1215_v0, 0.0  ;;  %v1656_v7 = vmax.f32 %v1328_v1, 0.0 }
 0x2f9   : > { %v1746_v13 = vmax.f32 %v1745_v49, %v1647_v3  ;;  %v1776_v14 = vmax.f32 %v1775_v50, %v1649_v4  ;;  %v1655_v15 = vmax.f32 %v1217_v5, 0.0  ;;  %v1657_v18 = vmax.f32 %v1330_v33, 0.0 }
 0x2fa   : > { %v1732_v20 = vmax.f32 %v1731_v62, %v1654_v8  ;;  %v1762_v21 = vmax.f32 %v1761_v42, %v1656_v7 }
 0x2fb   : > { %v1747_v23 = vmax.f32 %v1746_v13, %v1655_v15  ;;  %v1777_v16 = vmax.f32 %v1776_v14, %v1657_v18  ;;  %v1220_v19 = vpop.f32.mrb[32].mxu0  ;;  %v1333_v22 = vpop.f32.mrb[32].mxu1 }
 0x2fc   : > { %v1221_v24 = vadd.f32 %v1220_v19, %v2724_v9  ;;  %v1334_v25 = vadd.f32 %v1333_v22, %v2727_v10  ;;  %v1222_v26 = vpop.f32.mrb[33].mxu0  ;;  %v1335_v27 = vpop.f32.mrb[33].mxu1 }
 0x2fd   : > { %v1223_v28 = vadd.f32 %v1222_v26, %v2730_v11  ;;  %v1336_v29 = vadd.f32 %v1335_v27, %v2733_v12  ;;  %v1224_v30 = vpop.f32.mrb[34].mxu0  ;;  %v1337_v31 = vpop.f32.mrb[34].mxu1 }
 0x2fe   : > { %v1662_v32 = vmax.f32 %v1221_v24, 0.0  ;;  %v1664_v35 = vmax.f32 %v1334_v25, 0.0  ;;  %v1225_v36 = vadd.f32 %v1224_v30, %v2724_v9  ;;  %v1338_v37 = vadd.f32 %v1337_v31, %v2727_v10  ;;  %v1226_v38 = vpop.f32.mrb[35].mxu0  ;;  %v1339_v39 = vpop.f32.mrb[35].mxu1 }
 0x2ff   : > { %v1663_v40 = vmax.f32 %v1223_v28, 0.0  ;;  %v1665_v41 = vmax.f32 %v1336_v29, 0.0  ;;  %v1227_v43 = vadd.f32 %v1226_v38, %v2730_v11  ;;  %v1340_v44 = vadd.f32 %v1339_v39, %v2733_v12 }
 0x300   : > { %v1733_v45 = vmax.f32 %v1732_v20, %v1662_v32  ;;  %v1763_v46 = vmax.f32 %v1762_v21, %v1664_v35  ;;  %v1670_v47 = vmax.f32 %v1225_v36, 0.0  ;;  %v1672_v48 = vmax.f32 %v1338_v37, 0.0 }
 0x301   : > { %v1748_v49 = vmax.f32 %v1747_v23, %v1663_v40  ;;  %v1778_v50 = vmax.f32 %v1777_v16, %v1665_v41  ;;  %v1671_v51 = vmax.f32 %v1227_v43, 0.0  ;;  %v1673_v52 = vmax.f32 %v1340_v44, 0.0 }
 0x302   : > { %v1734_v53 = vmax.f32 %v1733_v45, %v1670_v47  ;;  %v1764_v54 = vmax.f32 %v1763_v46, %v1672_v48  ;;  %v804_v36 = vsub.s32 4, %v2712_v34  ;;  %v812_v37 = vsub.s32 6, %v2712_v34 }
 0x303   : > { %v1749_v55 = vmax.f32 %v1748_v49, %v1671_v51  ;;  %v1779_v56 = vmax.f32 %v1778_v50, %v1673_v52  ;;  %v1230_v57 = vpop.f32.mrb[36].mxu0  ;;  %v1343_v58 = vpop.f32.mrb[36].mxu1  ;;  %v808_v43 = vsub.s32 5, %v2712_v34  ;;  %v816_v44 = vsub.s32 7, %v2712_v34 }
 0x304   : > { %v1231_v59 = vadd.f32 %v1230_v57, %v2724_v9  ;;  %v1344_v60 = vadd.f32 %v1343_v58, %v2727_v10  ;;  %v1232_v61 = vpop.f32.mrb[37].mxu0  ;;  %v1345_v63 = vpop.f32.mrb[37].mxu1 }
 0x305   : > { %v1233_v0 = vadd.f32 %v1232_v61, %v2730_v11  ;;  %v1346_v1 = vadd.f32 %v1345_v63, %v2733_v12  ;;  %v1234_v2 = vpop.f32.mrb[38].mxu0  ;;  %v1347_v17 = vpop.f32.mrb[38].mxu1 }
 0x306   : > { %v1678_v3 = vmax.f32 %v1231_v59, 0.0  ;;  %v1680_v4 = vmax.f32 %v1344_v60, 0.0  ;;  %v1235_v5 = vadd.f32 %v1234_v2, %v2724_v9  ;;  %v1348_v33 = vadd.f32 %v1347_v17, %v2727_v10  ;;  %v1236_v62 = vpop.f32.mrb[39].mxu0  ;;  %v1349_v42 = vpop.f32.mrb[39].mxu1 }
 0x307   : > { %v1679_v8 = vmax.f32 %v1233_v0, 0.0  ;;  %v1681_v7 = vmax.f32 %v1346_v1, 0.0  ;;  %v1237_v13 = vadd.f32 %v1236_v62, %v2730_v11  ;;  %v1350_v14 = vadd.f32 %v1349_v42, %v2733_v12 }
 0x308   : > { %v1735_v15 = vmax.f32 %v1734_v53, %v1678_v3  ;;  %v1765_v18 = vmax.f32 %v1764_v54, %v1680_v4  ;;  %v1686_v20 = vmax.f32 %v1235_v5, 0.0  ;;  %v1688_v21 = vmax.f32 %v1348_v33, 0.0 }
 0x309   : > { %v1750_v23 = vmax.f32 %v1749_v55, %v1679_v8  ;;  %v1780_v16 = vmax.f32 %v1779_v56, %v1681_v7  ;;  %v1687_v19 = vmax.f32 %v1237_v13, 0.0  ;;  %v1689_v22 = vmax.f32 %v1350_v14, 0.0 }
 0x30a   : > { %v1736_v24 = vmax.f32 %v1735_v15, %v1686_v20  ;;  %v1766_v25 = vmax.f32 %v1765_v18, %v1688_v21  ;;  %v2798_v42 = vrot.slane %v2719_v6, %v804_v36  ;;  %v2801_v8 = vrot.slane %v2719_v6, %v812_v37 }
 0x30b   : > { %v1751_v26 = vmax.f32 %v1750_v23, %v1687_v19  ;;  %v1781_v27 = vmax.f32 %v1780_v16, %v1689_v22  ;;  %v1240_v28 = vpop.f32.mrb[40].mxu0  ;;  %v1353_v29 = vpop.f32.mrb[40].mxu1  ;;  %v2806_v18 = vrot.slane %v2719_v6, %v808_v43  ;;  %v2809_v20 = vrot.slane %v2719_v6, %v816_v44 }
 0x30c   : > { %v1241_v30 = vadd.f32 %v1240_v28, %v2724_v9  ;;  %v1354_v31 = vadd.f32 %v1353_v29, %v2727_v10  ;;  %v1242_v32 = vpop.f32.mrb[41].mxu0  ;;  %v1355_v35 = vpop.f32.mrb[41].mxu1 }
 0x30d   : > { %v1243_v38 = vadd.f32 %v1242_v32, %v2730_v11  ;;  %v1356_v39 = vadd.f32 %v1355_v35, %v2733_v12  ;;  %v1244_v40 = vpop.f32.mrb[42].mxu0  ;;  %v1357_v41 = vpop.f32.mrb[42].mxu1 }
 0x30e   : > { %v1694_v45 = vmax.f32 %v1241_v30, 0.0  ;;  %v1696_v46 = vmax.f32 %v1354_v31, 0.0  ;;  %v1245_v47 = vadd.f32 %v1244_v40, %v2724_v9  ;;  %v1358_v48 = vadd.f32 %v1357_v41, %v2727_v10  ;;  %v1246_v49 = vpop.f32.mrb[43].mxu0  ;;  %v1359_v50 = vpop.f32.mrb[43].mxu1 }
 0x30f   : > { %v1695_v51 = vmax.f32 %v1243_v38, 0.0  ;;  %v1697_v52 = vmax.f32 %v1356_v39, 0.0  ;;  %v1247_v53 = vadd.f32 %v1246_v49, %v2730_v11  ;;  %v1360_v54 = vadd.f32 %v1359_v50, %v2733_v12 }
 0x310   : > { %v1737_v55 = vmax.f32 %v1736_v24, %v1694_v45  ;;  %v1767_v56 = vmax.f32 %v1766_v25, %v1696_v46  ;;  %v1702_v57 = vmax.f32 %v1245_v47, 0.0  ;;  %v1704_v58 = vmax.f32 %v1358_v48, 0.0 }
 0x311   : > { %v1752_v59 = vmax.f32 %v1751_v26, %v1695_v51  ;;  %v1782_v34 = vmax.f32 %v1781_v27, %v1697_v52  ;;  %v1703_v60 = vmax.f32 %v1247_v53, 0.0  ;;  %v1705_v61 = vmax.f32 %v1360_v54, 0.0 }
 0x312   : > { %v1738_v63 = vmax.f32 %v1737_v55, %v1702_v57  ;;  %v1768_v0 = vmax.f32 %v1767_v56, %v1704_v58 }
 0x313   : > { %v1753_v1 = vmax.f32 %v1752_v59, %v1703_v60  ;;  %v1783_v2 = vmax.f32 %v1782_v34, %v1705_v61  ;;  %v1250_v17 = vpop.f32.mrb[44].mxu0  ;;  %v1363_v3 = vpop.f32.mrb[44].mxu1 }
 0x314   : > { %v1251_v4 = vadd.f32 %v1250_v17, %v2724_v9  ;;  %v1364_v5 = vadd.f32 %v1363_v3, %v2727_v10  ;;  %v1252_v33 = vpop.f32.mrb[45].mxu0  ;;  %v1365_v62 = vpop.f32.mrb[45].mxu1 }
 0x315   : > { %v1253_v7 = vadd.f32 %v1252_v33, %v2730_v11  ;;  %v1366_v13 = vadd.f32 %v1365_v62, %v2733_v12  ;;  %v1254_v14 = vpop.f32.mrb[46].mxu0  ;;  %v1367_v15 = vpop.f32.mrb[46].mxu1 }
 0x316   : > { %v1710_v21 = vmax.f32 %v1251_v4, 0.0  ;;  %v1712_v23 = vmax.f32 %v1364_v5, 0.0  ;;  %v1255_v16 = vadd.f32 %v1254_v14, %v2724_v9  ;;  %v1368_v19 = vadd.f32 %v1367_v15, %v2727_v10  ;;  %v1256_v22 = vpop.f32.mrb[47].mxu0  ;;  %v1369_v24 = vpop.f32.mrb[47].mxu1 }
 0x317   : > { %v1711_v25 = vmax.f32 %v1253_v7, 0.0  ;;  %v1713_v26 = vmax.f32 %v1366_v13, 0.0  ;;  %v1257_v27 = vadd.f32 %v1256_v22, %v2730_v11  ;;  %v1370_v28 = vadd.f32 %v1369_v24, %v2733_v12 }
 0x318   : > { %v1739_v29 = vmax.f32 %v1738_v63, %v1710_v21  ;;  %v1769_v30 = vmax.f32 %v1768_v0, %v1712_v23  ;;  %v1718_v31 = vmax.f32 %v1255_v16, 0.0  ;;  %v1720_v32 = vmax.f32 %v1368_v19, 0.0 }
 0x319   : > { %v1754_v6 = vmax.f32 %v1753_v1, %v1711_v25  ;;  %v1784_v35 = vmax.f32 %v1783_v2, %v1713_v26  ;;  %v1719_v36 = vmax.f32 %v1257_v27, 0.0  ;;  %v1721_v37 = vmax.f32 %v1370_v28, 0.0 }
 0x31a   : > { %v2815_v38 = vmax.f32 %v1739_v29, %v1718_v31  ;;  %v2817_v9 = vmax.f32 %v1769_v30, %v1720_v32 }
 0x31b   : > { %v2819_v10 = vmax.f32 %v1754_v6, %v1719_v36  ;;  %v2821_v39 = vmax.f32 %v1784_v35, %v1721_v37  ;;  %v1406_v40 = vpop.f32.mrb[48].mxu0  ;;  %v1519_v11 = vpop.f32.mrb[48].mxu1 }
 0x31c   : > { %v1407_v12 = vadd.f32 %v1406_v40, %v2798_v42  ;;  %v1520_v41 = vadd.f32 %v1519_v11, %v2801_v8  ;;  %v1408_v43 = vpop.f32.mrb[49].mxu0  ;;  %v1521_v44 = vpop.f32.mrb[49].mxu1  ;;  %1850 = vst [vmem:[%s2888_s12] sm:$0xff] (!%p2094_p10), %v2815_v38  ;;  %1852 = vst [vmem:[%s2888_s12 + $0x10] sm:$0xff] (!%p2094_p10), %v2817_v9 }
 0x31d   : > { %v1409_v45 = vadd.f32 %v1408_v43, %v2806_v18  ;;  %v1522_v46 = vadd.f32 %v1521_v44, %v2809_v20  ;;  %v1410_v47 = vpop.f32.mrb[50].mxu0  ;;  %v1523_v48 = vpop.f32.mrb[50].mxu1  ;;  %1851 = vst [vmem:[%s2888_s12 + $0x8] sm:$0xff] (!%p2094_p10), %v2819_v10  ;;  %1853 = vst [vmem:[%s2888_s12 + $0x18] sm:$0xff] (!%p2094_p10), %v2821_v39 }
 0x31e   : > { %v1411_v49 = vadd.f32 %v1410_v47, %v2798_v42  ;;  %v1524_v50 = vadd.f32 %v1523_v48, %v2801_v8  ;;  %v1412_v51 = vpop.f32.mrb[51].mxu0  ;;  %v1525_v52 = vpop.f32.mrb[51].mxu1  ;;  %v1602_v55 = vmax.f32 %v1407_v12, 0.0  ;;  %v1604_v56 = vmax.f32 %v1520_v41, 0.0 }
 0x31f   : > { %v1413_v53 = vadd.f32 %v1412_v51, %v2806_v18  ;;  %v1526_v54 = vadd.f32 %v1525_v52, %v2809_v20  ;;  %v1603_v59 = vmax.f32 %v1409_v45, 0.0  ;;  %v1605_v34 = vmax.f32 %v1522_v46, 0.0 }
 0x320   : > { %v1610_v57 = vmax.f32 %v1411_v49, 0.0  ;;  %v1612_v58 = vmax.f32 %v1524_v50, 0.0 }
 0x321   : > { %v1611_v60 = vmax.f32 %v1413_v53, 0.0  ;;  %v1613_v61 = vmax.f32 %v1526_v54, 0.0 }
 0x322   : > { %v1786_v63 = vmax.f32 %v1602_v55, %v1610_v57  ;;  %v1816_v0 = vmax.f32 %v1604_v56, %v1612_v58 }
 0x323   : > { %v1801_v1 = vmax.f32 %v1603_v59, %v1611_v60  ;;  %v1831_v2 = vmax.f32 %v1605_v34, %v1613_v61  ;;  %v1416_v17 = vpop.f32.mrb[52].mxu0  ;;  %v1529_v3 = vpop.f32.mrb[52].mxu1 }
 0x324   : > { %v1417_v4 = vadd.f32 %v1416_v17, %v2798_v42  ;;  %v1530_v5 = vadd.f32 %v1529_v3, %v2801_v8  ;;  %v1418_v33 = vpop.f32.mrb[53].mxu0  ;;  %v1531_v62 = vpop.f32.mrb[53].mxu1 }
 0x325   : > { %v1419_v7 = vadd.f32 %v1418_v33, %v2806_v18  ;;  %v1532_v13 = vadd.f32 %v1531_v62, %v2809_v20  ;;  %v1420_v14 = vpop.f32.mrb[54].mxu0  ;;  %v1533_v15 = vpop.f32.mrb[54].mxu1 }
 0x326   : > { %v1618_v21 = vmax.f32 %v1417_v4, 0.0  ;;  %v1620_v23 = vmax.f32 %v1530_v5, 0.0  ;;  %v1421_v16 = vadd.f32 %v1420_v14, %v2798_v42  ;;  %v1534_v19 = vadd.f32 %v1533_v15, %v2801_v8  ;;  %v1422_v22 = vpop.f32.mrb[55].mxu0  ;;  %v1535_v24 = vpop.f32.mrb[55].mxu1 }
 0x327   : > { %v1619_v25 = vmax.f32 %v1419_v7, 0.0  ;;  %v1621_v26 = vmax.f32 %v1532_v13, 0.0  ;;  %v1423_v27 = vadd.f32 %v1422_v22, %v2806_v18  ;;  %v1536_v28 = vadd.f32 %v1535_v24, %v2809_v20 }
 0x328   : > { %v1787_v29 = vmax.f32 %v1786_v63, %v1618_v21  ;;  %v1817_v30 = vmax.f32 %v1816_v0, %v1620_v23  ;;  %v1626_v31 = vmax.f32 %v1421_v16, 0.0  ;;  %v1628_v32 = vmax.f32 %v1534_v19, 0.0 }
 0x329   : > { %v1802_v6 = vmax.f32 %v1801_v1, %v1619_v25  ;;  %v1832_v35 = vmax.f32 %v1831_v2, %v1621_v26  ;;  %v1627_v36 = vmax.f32 %v1423_v27, 0.0  ;;  %v1629_v37 = vmax.f32 %v1536_v28, 0.0 }
 0x32a   : > { %v1788_v40 = vmax.f32 %v1787_v29, %v1626_v31  ;;  %v1818_v11 = vmax.f32 %v1817_v30, %v1628_v32 }
 0x32b   : > { %v1803_v12 = vmax.f32 %v1802_v6, %v1627_v36  ;;  %v1833_v41 = vmax.f32 %v1832_v35, %v1629_v37  ;;  %v1426_v43 = vpop.f32.mrb[56].mxu0  ;;  %v1539_v44 = vpop.f32.mrb[56].mxu1 }
 0x32c   : > { %v1427_v45 = vadd.f32 %v1426_v43, %v2798_v42  ;;  %v1540_v46 = vadd.f32 %v1539_v44, %v2801_v8  ;;  %v1428_v47 = vpop.f32.mrb[57].mxu0  ;;  %v1541_v48 = vpop.f32.mrb[57].mxu1 }
 0x32d   : > { %v1429_v49 = vadd.f32 %v1428_v47, %v2806_v18  ;;  %v1542_v50 = vadd.f32 %v1541_v48, %v2809_v20  ;;  %v1430_v51 = vpop.f32.mrb[58].mxu0  ;;  %v1543_v52 = vpop.f32.mrb[58].mxu1 }
 0x32e   : > { %v1634_v53 = vmax.f32 %v1427_v45, 0.0  ;;  %v1636_v54 = vmax.f32 %v1540_v46, 0.0  ;;  %v1431_v55 = vadd.f32 %v1430_v51, %v2798_v42  ;;  %v1544_v56 = vadd.f32 %v1543_v52, %v2801_v8  ;;  %v1432_v57 = vpop.f32.mrb[59].mxu0  ;;  %v1545_v58 = vpop.f32.mrb[59].mxu1 }
 0x32f   : > { %v1635_v59 = vmax.f32 %v1429_v49, 0.0  ;;  %v1637_v34 = vmax.f32 %v1542_v50, 0.0  ;;  %v1433_v60 = vadd.f32 %v1432_v57, %v2806_v18  ;;  %v1546_v61 = vadd.f32 %v1545_v58, %v2809_v20 }
 0x330   : > { %v1789_v63 = vmax.f32 %v1788_v40, %v1634_v53  ;;  %v1819_v0 = vmax.f32 %v1818_v11, %v1636_v54  ;;  %v1642_v1 = vmax.f32 %v1431_v55, 0.0  ;;  %v1644_v2 = vmax.f32 %v1544_v56, 0.0 }
 0x331   : > { %v1804_v17 = vmax.f32 %v1803_v12, %v1635_v59  ;;  %v1834_v3 = vmax.f32 %v1833_v41, %v1637_v34  ;;  %v1643_v4 = vmax.f32 %v1433_v60, 0.0  ;;  %v1645_v5 = vmax.f32 %v1546_v61, 0.0 }
 0x332   : > { %v1790_v33 = vmax.f32 %v1789_v63, %v1642_v1  ;;  %v1820_v62 = vmax.f32 %v1819_v0, %v1644_v2 }
 0x333   : > { %v1805_v7 = vmax.f32 %v1804_v17, %v1643_v4  ;;  %v1835_v13 = vmax.f32 %v1834_v3, %v1645_v5  ;;  %v1436_v14 = vpop.f32.mrb[60].mxu0  ;;  %v1549_v15 = vpop.f32.mrb[60].mxu1 }
 0x334   : > { %v1437_v21 = vadd.f32 %v1436_v14, %v2798_v42  ;;  %v1550_v23 = vadd.f32 %v1549_v15, %v2801_v8  ;;  %v1438_v16 = vpop.f32.mrb[61].mxu0  ;;  %v1551_v19 = vpop.f32.mrb[61].mxu1 }
 0x335   : > { %v1439_v22 = vadd.f32 %v1438_v16, %v2806_v18  ;;  %v1552_v24 = vadd.f32 %v1551_v19, %v2809_v20  ;;  %v1440_v25 = vpop.f32.mrb[62].mxu0  ;;  %v1553_v26 = vpop.f32.mrb[62].mxu1 }
 0x336   : > { %v1650_v27 = vmax.f32 %v1437_v21, 0.0  ;;  %v1652_v28 = vmax.f32 %v1550_v23, 0.0  ;;  %v1441_v29 = vadd.f32 %v1440_v25, %v2798_v42  ;;  %v1554_v30 = vadd.f32 %v1553_v26, %v2801_v8  ;;  %v1442_v31 = vpop.f32.mrb[63].mxu0  ;;  %v1555_v32 = vpop.f32.mrb[63].mxu1 }
 0x337   : > { %v1651_v6 = vmax.f32 %v1439_v22, 0.0  ;;  %v1653_v35 = vmax.f32 %v1552_v24, 0.0  ;;  %v1443_v36 = vadd.f32 %v1442_v31, %v2806_v18  ;;  %v1556_v37 = vadd.f32 %v1555_v32, %v2809_v20 }
 0x338   : > { %v1791_v40 = vmax.f32 %v1790_v33, %v1650_v27  ;;  %v1821_v11 = vmax.f32 %v1820_v62, %v1652_v28  ;;  %v1658_v12 = vmax.f32 %v1441_v29, 0.0  ;;  %v1660_v41 = vmax.f32 %v1554_v30, 0.0 }
 0x339   : > { %v1806_v43 = vmax.f32 %v1805_v7, %v1651_v6  ;;  %v1836_v44 = vmax.f32 %v1835_v13, %v1653_v35  ;;  %v1659_v45 = vmax.f32 %v1443_v36, 0.0  ;;  %v1661_v46 = vmax.f32 %v1556_v37, 0.0 }
 0x33a   : > { %v1792_v47 = vmax.f32 %v1791_v40, %v1658_v12  ;;  %v1822_v48 = vmax.f32 %v1821_v11, %v1660_v41 }
 0x33b   : > { %v1807_v49 = vmax.f32 %v1806_v43, %v1659_v45  ;;  %v1837_v50 = vmax.f32 %v1836_v44, %v1661_v46  ;;  %v1446_v51 = vpop.f32.mrb[64].mxu0  ;;  %v1559_v52 = vpop.f32.mrb[64].mxu1 }
 0x33c   : > { %v1447_v53 = vadd.f32 %v1446_v51, %v2798_v42  ;;  %v1560_v54 = vadd.f32 %v1559_v52, %v2801_v8  ;;  %v1448_v55 = vpop.f32.mrb[65].mxu0  ;;  %v1561_v56 = vpop.f32.mrb[65].mxu1 }
 0x33d   : > { %v1449_v57 = vadd.f32 %v1448_v55, %v2806_v18  ;;  %v1562_v58 = vadd.f32 %v1561_v56, %v2809_v20  ;;  %v1450_v59 = vpop.f32.mrb[66].mxu0  ;;  %v1563_v34 = vpop.f32.mrb[66].mxu1 }
 0x33e   : > { %v1666_v60 = vmax.f32 %v1447_v53, 0.0  ;;  %v1668_v61 = vmax.f32 %v1560_v54, 0.0  ;;  %v1451_v63 = vadd.f32 %v1450_v59, %v2798_v42  ;;  %v1564_v0 = vadd.f32 %v1563_v34, %v2801_v8  ;;  %v1452_v1 = vpop.f32.mrb[67].mxu0  ;;  %v1565_v2 = vpop.f32.mrb[67].mxu1 }
 0x33f   : > { %v1667_v17 = vmax.f32 %v1449_v57, 0.0  ;;  %v1669_v3 = vmax.f32 %v1562_v58, 0.0  ;;  %v1453_v4 = vadd.f32 %v1452_v1, %v2806_v18  ;;  %v1566_v5 = vadd.f32 %v1565_v2, %v2809_v20 }
 0x340   : > { %v1793_v33 = vmax.f32 %v1792_v47, %v1666_v60  ;;  %v1823_v62 = vmax.f32 %v1822_v48, %v1668_v61  ;;  %v1674_v7 = vmax.f32 %v1451_v63, 0.0  ;;  %v1676_v13 = vmax.f32 %v1564_v0, 0.0 }
 0x341   : > { %v1808_v14 = vmax.f32 %v1807_v49, %v1667_v17  ;;  %v1838_v15 = vmax.f32 %v1837_v50, %v1669_v3  ;;  %v1675_v21 = vmax.f32 %v1453_v4, 0.0  ;;  %v1677_v23 = vmax.f32 %v1566_v5, 0.0 }
 0x342   : > { %v1794_v16 = vmax.f32 %v1793_v33, %v1674_v7  ;;  %v1824_v19 = vmax.f32 %v1823_v62, %v1676_v13 }
 0x343   : > { %v1809_v22 = vmax.f32 %v1808_v14, %v1675_v21  ;;  %v1839_v24 = vmax.f32 %v1838_v15, %v1677_v23  ;;  %v1456_v25 = vpop.f32.mrb[68].mxu0  ;;  %v1569_v26 = vpop.f32.mrb[68].mxu1 }
 0x344   : > { %v1457_v27 = vadd.f32 %v1456_v25, %v2798_v42  ;;  %v1570_v28 = vadd.f32 %v1569_v26, %v2801_v8  ;;  %v1458_v29 = vpop.f32.mrb[69].mxu0  ;;  %v1571_v30 = vpop.f32.mrb[69].mxu1 }
 0x345   : > { %v1459_v31 = vadd.f32 %v1458_v29, %v2806_v18  ;;  %v1572_v32 = vadd.f32 %v1571_v30, %v2809_v20  ;;  %v1460_v6 = vpop.f32.mrb[70].mxu0  ;;  %v1573_v35 = vpop.f32.mrb[70].mxu1 }
 0x346   : > { %v1682_v36 = vmax.f32 %v1457_v27, 0.0  ;;  %v1684_v37 = vmax.f32 %v1570_v28, 0.0  ;;  %v1461_v40 = vadd.f32 %v1460_v6, %v2798_v42  ;;  %v1574_v11 = vadd.f32 %v1573_v35, %v2801_v8  ;;  %v1462_v12 = vpop.f32.mrb[71].mxu0  ;;  %v1575_v41 = vpop.f32.mrb[71].mxu1 }
 0x347   : > { %v1683_v43 = vmax.f32 %v1459_v31, 0.0  ;;  %v1685_v44 = vmax.f32 %v1572_v32, 0.0  ;;  %v1463_v45 = vadd.f32 %v1462_v12, %v2806_v18  ;;  %v1576_v46 = vadd.f32 %v1575_v41, %v2809_v20 }
 0x348   : > { %v1795_v47 = vmax.f32 %v1794_v16, %v1682_v36  ;;  %v1825_v48 = vmax.f32 %v1824_v19, %v1684_v37  ;;  %v1690_v49 = vmax.f32 %v1461_v40, 0.0  ;;  %v1692_v50 = vmax.f32 %v1574_v11, 0.0 }
 0x349   : > { %v1810_v51 = vmax.f32 %v1809_v22, %v1683_v43  ;;  %v1840_v52 = vmax.f32 %v1839_v24, %v1685_v44  ;;  %v1691_v53 = vmax.f32 %v1463_v45, 0.0  ;;  %v1693_v54 = vmax.f32 %v1576_v46, 0.0 }
 0x34a   : > { %v1796_v55 = vmax.f32 %v1795_v47, %v1690_v49  ;;  %v1826_v56 = vmax.f32 %v1825_v48, %v1692_v50 }
 0x34b   : > { %v1811_v57 = vmax.f32 %v1810_v51, %v1691_v53  ;;  %v1841_v58 = vmax.f32 %v1840_v52, %v1693_v54  ;;  %v1466_v59 = vpop.f32.mrb[72].mxu0  ;;  %v1579_v34 = vpop.f32.mrb[72].mxu1 }
 0x34c   : > { %v1467_v60 = vadd.f32 %v1466_v59, %v2798_v42  ;;  %v1580_v61 = vadd.f32 %v1579_v34, %v2801_v8  ;;  %v1468_v63 = vpop.f32.mrb[73].mxu0  ;;  %v1581_v0 = vpop.f32.mrb[73].mxu1 }
 0x34d   : > { %v1469_v1 = vadd.f32 %v1468_v63, %v2806_v18  ;;  %v1582_v2 = vadd.f32 %v1581_v0, %v2809_v20  ;;  %v1470_v17 = vpop.f32.mrb[74].mxu0  ;;  %v1583_v3 = vpop.f32.mrb[74].mxu1 }
 0x34e   : > { %v1698_v4 = vmax.f32 %v1467_v60, 0.0  ;;  %v1700_v5 = vmax.f32 %v1580_v61, 0.0  ;;  %v1471_v33 = vadd.f32 %v1470_v17, %v2798_v42  ;;  %v1584_v62 = vadd.f32 %v1583_v3, %v2801_v8  ;;  %v1472_v7 = vpop.f32.mrb[75].mxu0  ;;  %v1585_v13 = vpop.f32.mrb[75].mxu1 }
 0x34f   : > { %v1699_v14 = vmax.f32 %v1469_v1, 0.0  ;;  %v1701_v15 = vmax.f32 %v1582_v2, 0.0  ;;  %v1473_v21 = vadd.f32 %v1472_v7, %v2806_v18  ;;  %v1586_v23 = vadd.f32 %v1585_v13, %v2809_v20 }
 0x350   : > { %v1797_v16 = vmax.f32 %v1796_v55, %v1698_v4  ;;  %v1827_v19 = vmax.f32 %v1826_v56, %v1700_v5  ;;  %v1706_v22 = vmax.f32 %v1471_v33, 0.0  ;;  %v1708_v24 = vmax.f32 %v1584_v62, 0.0 }
 0x351   : > { %v1812_v25 = vmax.f32 %v1811_v57, %v1699_v14  ;;  %v1842_v26 = vmax.f32 %v1841_v58, %v1701_v15  ;;  %v1707_v27 = vmax.f32 %v1473_v21, 0.0  ;;  %v1709_v28 = vmax.f32 %v1586_v23, 0.0 }
 0x352   : > { %v1798_v29 = vmax.f32 %v1797_v16, %v1706_v22  ;;  %v1828_v30 = vmax.f32 %v1827_v19, %v1708_v24 }
 0x353   : > { %v1813_v31 = vmax.f32 %v1812_v25, %v1707_v27  ;;  %v1843_v32 = vmax.f32 %v1842_v26, %v1709_v28  ;;  %v1476_v6 = vpop.f32.mrb[76].mxu0  ;;  %v1589_v35 = vpop.f32.mrb[76].mxu1 }
 0x354   : > { %v1477_v36 = vadd.f32 %v1476_v6, %v2798_v42  ;;  %v1590_v37 = vadd.f32 %v1589_v35, %v2801_v8  ;;  %v1478_v40 = vpop.f32.mrb[77].mxu0  ;;  %v1591_v11 = vpop.f32.mrb[77].mxu1 }
 0x355   : > { %v1479_v12 = vadd.f32 %v1478_v40, %v2806_v18  ;;  %v1592_v41 = vadd.f32 %v1591_v11, %v2809_v20  ;;  %v1480_v43 = vpop.f32.mrb[78].mxu0  ;;  %v1593_v44 = vpop.f32.mrb[78].mxu1  ;;  %1849 = sbr.rel (%p2094_p10) target bundleno = 862 (0x35e), region = 56 }
 0x356   : > { %v1714_v45 = vmax.f32 %v1477_v36, 0.0  ;;  %v1716_v46 = vmax.f32 %v1590_v37, 0.0  ;;  %v1481_v47 = vadd.f32 %v1480_v43, %v2798_v42  ;;  %v1594_v48 = vadd.f32 %v1593_v44, %v2801_v8  ;;  %v1482_v49 = vpop.f32.mrb[79].mxu0  ;;  %v1595_v50 = vpop.f32.mrb[79].mxu1 }
 0x357   : > { %v1715_v51 = vmax.f32 %v1479_v12, 0.0  ;;  %v1717_v52 = vmax.f32 %v1592_v41, 0.0  ;;  %v1483_v53 = vadd.f32 %v1482_v49, %v2806_v18  ;;  %v1596_v54 = vadd.f32 %v1595_v50, %v2809_v20 }
 0x358   : > { %v1799_v55 = vmax.f32 %v1798_v29, %v1714_v45  ;;  %v1829_v56 = vmax.f32 %v1828_v30, %v1716_v46  ;;  %v1722_v57 = vmax.f32 %v1481_v47, 0.0  ;;  %v1724_v58 = vmax.f32 %v1594_v48, 0.0 }
 0x359   : > { %v1814_v59 = vmax.f32 %v1813_v31, %v1715_v51  ;;  %v1844_v34 = vmax.f32 %v1843_v32, %v1717_v52  ;;  %v1723_v60 = vmax.f32 %v1483_v53, 0.0  ;;  %v1725_v61 = vmax.f32 %v1596_v54, 0.0 }
 0x35a   : > { %v1800_v42 = vmax.f32 %v1799_v55, %v1722_v57  ;;  %v1830_v63 = vmax.f32 %v1829_v56, %v1724_v58 }
 0x35b   : > { %v1815_v8 = vmax.f32 %v1814_v59, %v1723_v60  ;;  %v1845_v0 = vmax.f32 %v1844_v34, %v1725_v61 }
 0x35c   : > { %1854 = vst [vmem:[%s2888_s12 + $0x20] sm:$0xff] %v1800_v42  ;;  %1856 = vst [vmem:[%s2888_s12 + $0x30] sm:$0xff] %v1830_v63 }
 0x35d   : > { %1855 = vst [vmem:[%s2888_s12 + $0x28] sm:$0xff] %v1815_v8  ;;  %1857 = vst [vmem:[%s2888_s12 + $0x38] sm:$0xff] %v1845_v0 }
 0x35e PF: > { %p2095_p13 = scmp.le.s32.totalorder %s2373_s27, 0 }
 0x35f   : > { %v1862_v18 = vld [vmem:[%s2888_s12] sm:$0xff] (!%p2095_p13)  ;;  %v1863_v20 = vld [vmem:[%s2888_s12 + $0x8] sm:$0xff] (!%p2095_p13)  ;;  %v1864_v1 = vld [vmem:[%s2888_s12 + $0x10] sm:$0xff] (!%p2095_p13) }
 0x360   : > { %1861 = sbr.rel (%p2095_p13) target bundleno = 873 (0x369), region = 60  ;;  %v1870_v2 = vmax.f32 (!%p2095_p13), %v1862_v18, %v2815_v38  ;;  %v1871_v17 = vmax.f32 (!%p2095_p13), %v1863_v20, %v2819_v10  ;;  %v1872_v3 = vmax.f32 (!%p2095_p13), %v1864_v1, %v2817_v9  ;;  %v1865_v4 = vld [vmem:[%s2888_s12 + $0x18] sm:$0xff] (!%p2095_p13) }
 0x361   : > { %v1873_v62 = vmax.f32 (!%p2095_p13), %v1865_v4, %v2821_v39 }
 0x362   : > { %1878 = vst [vmem:[%s2888_s12] sm:$0xff] (!%p2095_p13), %v1870_v2  ;;  %1879 = vst [vmem:[%s2888_s12 + $0x8] sm:$0xff] (!%p2095_p13), %v1871_v17 }
 0x363   : > { %1880 = vst [vmem:[%s2888_s12 + $0x10] sm:$0xff] (!%p2095_p13), %v1872_v3  ;;  %1881 = vst [vmem:[%s2888_s12 + $0x18] sm:$0xff] (!%p2095_p13), %v1873_v62 }
 0x364   : > { %v1867_v33 = vld [vmem:[%s2888_s12 + $0x28] sm:$0xff] (!%p2095_p13)  ;;  %v1869_v15 = vld [vmem:[%s2888_s12 + $0x38] sm:$0xff] (!%p2095_p13) }
 0x365   : > { %v1866_v5 = vld [vmem:[%s2888_s12 + $0x20] sm:$0xff] (!%p2095_p13)  ;;  %v1875_v13 = vmax.f32 (!%p2095_p13), %v1867_v33, %v1815_v8  ;;  %v1868_v14 = vld [vmem:[%s2888_s12 + $0x30] sm:$0xff] (!%p2095_p13)  ;;  %v1877_v10 = vmax.f32 (!%p2095_p13), %v1869_v15, %v1845_v0 }
 0x366   : > { %v1874_v7 = vmax.f32 (!%p2095_p13), %v1866_v5, %v1800_v42  ;;  %v1876_v38 = vmax.f32 (!%p2095_p13), %v1868_v14, %v1830_v63 }
 0x367   : > { %1883 = vst [vmem:[%s2888_s12 + $0x28] sm:$0xff] %v1875_v13  ;;  %1885 = vst [vmem:[%s2888_s12 + $0x38] sm:$0xff] %v1877_v10 }
 0x368   : > { %1882 = vst [vmem:[%s2888_s12 + $0x20] sm:$0xff] %v1874_v7  ;;  %1884 = vst [vmem:[%s2888_s12 + $0x30] sm:$0xff] %v1876_v38 }
 0x369 PF: > { %s2101_s27 = sshll.u32 %s2377_s28, 10  ;;  %s1901_s9 = sshll.u32 %s2888_s12, 4  ;;  %s1902_s9 = int_to_ptr.vmem [resolvable:$true] %s1901_s9 }
 0x36a   : > { %s2928_s10 = scalar_lea.hbm %s2985_s7, %s2101_s27  ;;  %s3007_s29 = sand.u32 1, %s2365_s25  }
 0x36b   : > { %s1887_s30 = scalar_lea.sflag [#allocation4], %s3007_s29  ;;  %s2291_s11 = scalar_lea.vmem %s1902_s9, 1024 }
 0x36c   : > { %p2292_p0 = scmp.ne.s32.totalorder %s1902_s9, %s2291_s11  ;;  %p3008_p2 = scmp.ne.s32.totalorder %s2998_s14, 0 }
 0x36d   : > { %s2395_s22 = smov [#allocation5]  }
 0x36e   : > { %p2293_p5 = pnand %p2292_p0, %p3008_p2  ;;  %s2295_s5 = sshll.u32 %s2395_s22, 4  ;;  %s2296_s5 = int_to_ptr.vmem [resolvable:$false] %s2295_s5 }
 0x36f   : > { %s2297_s16 = scalar_lea.vmem %s2296_s5, 2048  ;;  %p2298_p7 = scmp.lt.s32.totalorder %s1902_s9, %s2296_s5 }
 0x370   : > { %p2294_p6 = pneg %p2293_p5  ;;  %p2299_p8 = scmp.lt.s32.totalorder %s2297_s16, %s2291_s11 }
 0x372   : > { %p2300_p11 = por %p2299_p8, %p2298_p7 }
 0x374   : > { %p2301_p12 = pnand %p2300_p11, %p2294_p6 }
 0x376   : > { %2304 = shalt.err (!%p2301_p12)
}
 0x377   : > { %s2305_s28 = scalar_lea.hbm %s2928_s10, 1024  ;;  %s2309_s18 = scalar_lea.hbm %s2985_s7, 2048 }
 0x378   : > { %p2306_p1 = scmp.ne.s32.totalorder %s2928_s10, %s2305_s28  ;;  %p2310_p9 = scmp.lt.u32.totalorder %s2928_s10, %s2985_s7 }
 0x379   : > { %p2311_p10 = scmp.lt.u32.totalorder %s2309_s18, %s2305_s28  ;;  %p2313_p0 = scmp.lt.u32.totalorder %s2305_s28, %s2928_s10 }
 0x37a   : > { %p2307_p4 = pnand %p2306_p1, %p3008_p2 }
 0x37b   : > { %p2312_p13 = por %p2311_p10, %p2310_p9 }
 0x37c   : > { %p2308_p3 = pneg %p2307_p4 }
 0x37d   : > { %p2314_p5 = por %p2313_p0, %p2312_p13 }
 0x37f   : > { %p2315_p6 = pnand %p2314_p5, %p2308_p3 }
 0x381   : > { %2318 = shalt.err (!%p2315_p6)
}
 0x382   : > { %2170 = dma.vmem_to_hbm [thread:$0]  (%p3008_p2), %s1902_s9, 1024, %s2928_s10, %s1887_s30  }
 0x383 PF: > { %p2182_p7 = scmp.ge.s32.totalorder %s2389_s8, 2  ;;  %s1913_s27 = sand.u32 1, %s2361_s24  }
 0x384   : > { %p3009_p8 = scmp.ne.s32.totalorder %s3000_s15, 0  ;;  %s1914_s17 = scalar_lea.sflag [#allocation4], %s1913_s27 }
 0x386   : > { %p2177_p11 = pnand %p2182_p7, %p3009_p8 }
 0x388   : > { %2356 = dma.done.wait (!%p2177_p11), %s1914_s17, 1024  }
 0x389   : > { %2358 = vsyncadd (!%p2177_p11), %s1914_s17, 4294966272  ;;  %s21_s8 = sadd.s32 1, %s2389_s8   ;;  %s3010_s27 = sld [smem:[#allocation8_spill]] }
 0x38a   : > { %p18_p12 = scmp.ge.s32.totalorder %s21_s8, 6   ;;  %s3011_s28 = sld [smem:[#allocation9_spill]] }
 0x38b   : > { %s3012_s29 = sld [smem:[#allocation10_spill]]  ;;  %s3013_s30 = sld [smem:[#allocation11_spill]] }
 0x38c   : > { %s3014_s24 = smov %s2365_s25  ;;  %s3015_s25 = smov %s2369_s26 }
 0x38d   : > { %s3016_s26 = smov %s2513_s19  ;;  %20 = sbr.rel (!%p18_p12) target bundleno = 8 (0x8), region = 96 }
 0x394   :  { %1919 = vsyncpa [#allocation3], 1 }
 0x395   :  { %1921 = vsyncpa [#allocation3 + $0x1], 1 }
 0x396   :  { %1922 = vsyncpa [#allocation4], 1 }
 0x397   :  { %1924 = vsyncpa [#allocation4 + $0x1], 1 }

</bundles_post_ra>
